<compile_context>
chip_gen: v7x
topology: tpu7x:2x2x1
jax: 0.10.0
libtpu: 0.0.40
codegen_flags: <defaults>
</compile_context>

<pallas_src>
import functools

import jax
import jax.numpy as jnp
from jax import lax
from jax.experimental import pallas as pl
from jax.experimental.pallas import tpu as pltpu


def _round_up(n, m):
    return ((n + m - 1) // m) * m


def _sigmoid(x):
    # sigmoid(x) == 0.5 * tanh(0.5 * x) + 0.5 : one EUP op instead of exp+recip.
    return 0.5 * jnp.tanh(0.5 * x) + 0.5


def _slstm_step(g_in, syn, mem, whh_ref, H, thr):
    """One snn.SLSTM step (reset_mechanism='subtract'); cell batch = T rows.

    g_in   : (T, 4H) f32, precomputed  x @ W_ih + b  (hoisted out of the loop).
    syn/mem: (T, H) f32 carried LSTM cell / hidden state.
    whh_ref: (H, 4H) bf16 recurrent weight ref.
    """
    f32 = jnp.float32
    reset = (mem > thr).astype(f32)                       # heaviside(prev_mem - thr)
    gates = g_in + jnp.dot(mem.astype(jnp.bfloat16), whh_ref[...],
                           preferred_element_type=f32)    # (T, 4H)
    i_g = _sigmoid(gates[:, 0:H])
    f_g = _sigmoid(gates[:, H:2 * H])
    g_g = jnp.tanh(gates[:, 2 * H:3 * H])
    o_g = _sigmoid(gates[:, 3 * H:4 * H])
    syn_new = f_g * syn + i_g * g_g                       # LSTM cell c
    mem_new = o_g * jnp.tanh(syn_new) - reset * thr       # hidden - subtract reset
    spk = (mem_new > thr).astype(f32)
    return spk, syn_new, mem_new


def fused_forward_kernel(xcol_ref, cw_ref, cb_ref,
                         wih1_ref, whh1_ref, b1_ref,
                         wih2_ref, whh2_ref, b2_ref,
                         bng_ref, bnb_ref, fcw_ref, fcb_ref,
                         out_ref,
                         gin_scr, spk1_scr,
                         *, B, T, H, lif_thr, thr1, thr2, bn_eps):
    f32 = jnp.float32
    bf16 = jnp.bfloat16

    # ---- phase A: conv (im2col, all B at once) + Leaky + hoisted SLSTM1 proj --
    cur_all = (jnp.dot(xcol_ref[...], cw_ref[...], preferred_element_type=f32)
               + cb_ref[...])                              # (B*T, OCP)
    spk_c = (cur_all > lif_thr).astype(bf16)               # Leaky: mem = beta*0 + cur
    gin_scr[...] = (jnp.dot(spk_c, wih1_ref[...], preferred_element_type=f32)
                    + b1_ref[...])                         # (B*T, 4H), bias folded once

    syn1 = jnp.zeros((T, H), f32)
    mem1 = jnp.zeros((T, H), f32)
    for b in range(B):                                     # serial: state carries over B
        spk1, syn1, mem1 = _slstm_step(gin_scr[b * T:(b + 1) * T, :],
                                       syn1, mem1, whh1_ref, H, thr1)
        spk1_scr[b * T:(b + 1) * T, :] = spk1              # keep for BN + SLSTM2

    # ---- phase B: BatchNorm1d over all (B*T, H) rows (batch statistics) -------
    spk_all = spk1_scr[...]
    mean = jnp.sum(spk_all, axis=0, keepdims=True) * (1.0 / (B * T))
    var = mean - mean * mean                               # spikes are exactly {0,1}
    inv = lax.rsqrt(var + bn_eps)
    scale = bng_ref[...] * inv                             # (1, H)
    shift = bnb_ref[...] - mean * scale                    # (1, H)
    spk1n = (spk_all * scale + shift).astype(bf16)         # (B*T, H)
    gin_scr[...] = (jnp.dot(spk1n, wih2_ref[...], preferred_element_type=f32)
                    + b2_ref[...])                         # hoisted SLSTM2 input proj

    # ---- phase C: SLSTM2 (serial) + running mean of mem2 ----------------------
    syn2 = jnp.zeros((T, H), f32)
    mem2 = jnp.zeros((T, H), f32)
    mem2_sum = jnp.zeros((T, H), f32)
    for b in range(B):
        _, syn2, mem2 = _slstm_step(gin_scr[b * T:(b + 1) * T, :],
                                    syn2, mem2, whh2_ref, H, thr2)
        mem2_sum = mem2_sum + mem2

    # ---- phase D: mean over steps + fc ----------------------------------------
    final_mem = (mem2_sum * (1.0 / B)).astype(bf16)        # (T, H)
    out_ref[...] = (jnp.dot(final_mem, fcw_ref[...], preferred_element_type=f32)
                    + fcb_ref[...])


def net_slstm_conv_forward(x, params):
    """x: (B, T, C) float32 -> (T, numClasses) float32 (matches the reference)."""
    B, T, C = x.shape
    H = params["bn_gamma"].shape[1]
    NC = params["fc_w"].shape[1]
    KC_PAD = params["conv_w"].shape[0]                     # padded im2col width

    # im2col for the K=3 same-padded temporal conv, batched over B.  Tiny
    # (~16 KB) and done once in XLA; the kernel sees one lane-dense matmul.
    xp = jnp.pad(x, ((0, 0), (1, 1), (0, 0)))              # (B, T+2, C)
    x_col = jnp.concatenate([xp[:, 0:T], xp[:, 1:T + 1], xp[:, 2:T + 2]],
                            axis=-1).reshape(B * T, 3 * C)
    x_col = jnp.pad(x_col, ((0, 0), (0, KC_PAD - 3 * C))).astype(jnp.bfloat16)

    kernel = functools.partial(
        fused_forward_kernel, B=B, T=T, H=H,
        lif_thr=1.0, thr1=1.0, thr2=1.0, bn_eps=1e-5)
    return pl.pallas_call(
        kernel,
        out_shape=jax.ShapeDtypeStruct((T, NC), jnp.float32),
        scratch_shapes=[
            pltpu.VMEM((B * T, 4 * H), jnp.float32),       # hoisted input-gate projections
            pltpu.VMEM((B * T, H), jnp.float32),           # spk1 record (BN + SLSTM2 input)
        ],
    )(x_col, params["conv_w"], params["conv_b"],
      params["w_ih1"], params["w_hh1"], params["b1"],
      params["w_ih2"], params["w_hh2"], params["b2"],
      params["bn_gamma"], params["bn_beta"],
      params["fc_w"], params["fc_b"])


# -----------------------------------------------------------------------------
# Deterministic parameter construction (shapes follow the module's __init__).
# Matmul weights stored bf16 (MXU-native); biases / BN params stay f32.
# -----------------------------------------------------------------------------
def build_params(key, *, C=14, OC=32, OCP=128, K=3, groups=2, H=128, num_classes=8):
    ks = jax.random.split(key, 8)
    og, ig = OC // groups, C // groups
    bf16, f32 = jnp.bfloat16, jnp.float32

    # grouped conv weight (OC, C/groups, K) realised as dense block-diagonal,
    # laid out as im2col weight (K*C -> KC_PAD rows, OCP columns, zero padded).
    wg = jax.random.normal(ks[0], (OC, ig, K), f32) * 0.5
    w_dense = jnp.zeros((OC, C, K), f32)
    for g in range(groups):
        w_dense = w_dense.at[g * og:(g + 1) * og, g * ig:(g + 1) * ig, :].set(
            wg[g * og:(g + 1) * og])
    conv_tap = jnp.transpose(w_dense, (2, 1, 0))                    # (K, C, OC)
    conv_w = jnp.zeros((K, C, OCP), f32).at[:, :, :OC].set(conv_tap)
    conv_w = conv_w.reshape(K * C, OCP)
    KC_PAD = _round_up(K * C, 128)
    conv_w = jnp.pad(conv_w, ((0, KC_PAD - K * C), (0, 0))).astype(bf16)
    conv_b = jnp.zeros((1, OCP), f32).at[:, :OC].set(
        jax.random.normal(ks[1], (1, OC), f32) * 0.1)

    def lstm_params(k, in_pad, in_real):
        k1, k2, k3 = jax.random.split(k, 3)
        w_ih = jnp.zeros((in_pad, 4 * H), f32).at[:in_real, :].set(
            jax.random.normal(k1, (in_real, 4 * H), f32) * 0.1)      # W_ih^T
        w_hh = jax.random.normal(k2, (H, 4 * H), f32) * 0.1          # W_hh^T
        b = jax.random.normal(k3, (1, 4 * H), f32) * 0.1             # b_ih + b_hh
        return w_ih.astype(bf16), w_hh.astype(bf16), b

    w_ih1, w_hh1, b1 = lstm_params(ks[2], OCP, OC)   # SLSTM1 input = conv spikes (32 real)
    w_ih2, w_hh2, b2 = lstm_params(ks[3], H, H)      # SLSTM2 input = H features

    return {
        "conv_w": conv_w, "conv_b": conv_b,
        "w_ih1": w_ih1, "w_hh1": w_hh1, "b1": b1,
        "w_ih2": w_ih2, "w_hh2": w_hh2, "b2": b2,
        "bn_gamma": jnp.ones((1, H), f32),           # BatchNorm1d init
        "bn_beta": jnp.zeros((1, H), f32),
        "fc_w": (jax.random.normal(ks[4], (H, num_classes), f32) * 0.1).astype(bf16),
        "fc_b": jax.random.normal(ks[5], (1, num_classes), f32) * 0.1,
    }


if __name__ == "__main__":
    B, T, C = 4, 16, 14          # batch, seq-length, channels (numChannels=14)
    H, NUM_CLASSES = 128, 8      # hiddenSize=128 (module default), numClasses=8

    key = jax.random.PRNGKey(0)
    kx, kp = jax.random.split(key)
    x = jax.random.normal(kx, (B, T, C), jnp.float32)
    params = build_params(kp, C=C, H=H, num_classes=NUM_CLASSES)

    out = jax.jit(net_slstm_conv_forward)(x, params)
    out = jax.block_until_ready(out)
    assert out.shape == (T, NUM_CLASSES), out.shape
    assert bool(jnp.all(jnp.isfinite(out)))
    print("KERNEL_OK")
</pallas_src>

<mosaic_0001>
module attributes {stable_mosaic.version = 11 : i64} {
  func.func @fused_forward_kernel(%arg0: memref<64x128xbf16, #tpu.memory_space<vmem>>, %arg1: memref<128x128xbf16, #tpu.memory_space<vmem>>, %arg2: memref<1x128xf32, #tpu.memory_space<vmem>>, %arg3: memref<128x512xbf16, #tpu.memory_space<vmem>>, %arg4: memref<128x512xbf16, #tpu.memory_space<vmem>>, %arg5: memref<1x512xf32, #tpu.memory_space<vmem>>, %arg6: memref<128x512xbf16, #tpu.memory_space<vmem>>, %arg7: memref<128x512xbf16, #tpu.memory_space<vmem>>, %arg8: memref<1x512xf32, #tpu.memory_space<vmem>>, %arg9: memref<1x128xf32, #tpu.memory_space<vmem>>, %arg10: memref<1x128xf32, #tpu.memory_space<vmem>>, %arg11: memref<128x8xbf16, #tpu.memory_space<vmem>>, %arg12: memref<1x8xf32, #tpu.memory_space<vmem>>, %arg13: memref<16x8xf32, #tpu.memory_space<vmem>>, %arg14: memref<64x512xf32, #tpu.memory_space<vmem>>, %arg15: memref<64x128xf32, #tpu.memory_space<vmem>>) attributes {dimension_semantics = [], scalar_prefetch = 0 : i64, scratch_operands = 2 : i64, tpu.core_type = #tpu.core_type<tc>} {
    %c0 = arith.constant 0 : index
    %c0_0 = arith.constant 0 : index
    %0 = vector.load %arg0[%c0, %c0_0] : memref<64x128xbf16, #tpu.memory_space<vmem>>, vector<64x128xbf16>
    %c0_1 = arith.constant 0 : index
    %c0_2 = arith.constant 0 : index
    %1 = vector.load %arg1[%c0_1, %c0_2] : memref<128x128xbf16, #tpu.memory_space<vmem>>, vector<128x128xbf16>
    %cst = arith.constant dense<0.000000e+00> : vector<64x128xf32>
    %2 = tpu.matmul %0, %1, %cst {dimension_numbers = #tpu.dot_dimension_numbers<[1], [0], [0], [1], [0, 0, 1, 1], [], []>} : vector<64x128xbf16>, vector<128x128xbf16>, vector<64x128xf32> -> vector<64x128xf32>
    %c0_3 = arith.constant 0 : index
    %c0_4 = arith.constant 0 : index
    %3 = vector.load %arg2[%c0_3, %c0_4] : memref<1x128xf32, #tpu.memory_space<vmem>>, vector<1x128xf32>
    %4 = vector.broadcast %3 : vector<1x128xf32> to vector<64x128xf32>
    %5 = arith.addf %2, %4 : vector<64x128xf32>
    %cst_5 = arith.constant 1.000000e+00 : f32
    %6 = vector.broadcast %cst_5 : f32 to vector<64x128xf32>
    %7 = arith.cmpf ogt, %5, %6 : vector<64x128xf32>
    %8 = arith.extui %7 : vector<64x128xi1> to vector<64x128xi32>
    %9 = arith.sitofp %8 : vector<64x128xi32> to vector<64x128xf32>
    %10 = arith.truncf %9 : vector<64x128xf32> to vector<64x128xbf16>
    %c0_6 = arith.constant 0 : index
    %c0_7 = arith.constant 0 : index
    %11 = vector.load %arg3[%c0_6, %c0_7] : memref<128x512xbf16, #tpu.memory_space<vmem>>, vector<128x512xbf16>
    %cst_8 = arith.constant dense<0.000000e+00> : vector<64x512xf32>
    %12 = tpu.matmul %10, %11, %cst_8 {dimension_numbers = #tpu.dot_dimension_numbers<[1], [0], [0], [1], [0, 0, 1, 1], [], []>} : vector<64x128xbf16>, vector<128x512xbf16>, vector<64x512xf32> -> vector<64x512xf32>
    %c0_9 = arith.constant 0 : index
    %c0_10 = arith.constant 0 : index
    %13 = vector.load %arg5[%c0_9, %c0_10] : memref<1x512xf32, #tpu.memory_space<vmem>>, vector<1x512xf32>
    %14 = vector.broadcast %13 : vector<1x512xf32> to vector<64x512xf32>
    %15 = arith.addf %12, %14 : vector<64x512xf32>
    %c0_11 = arith.constant 0 : index
    %c0_12 = arith.constant 0 : index
    %16 = vector.load %arg14[%c0_11, %c0_12] : memref<64x512xf32, #tpu.memory_space<vmem>>, vector<64x512xf32>
    tpu.vector_store %arg14[%c0_11, %c0_12], %15 {strides = array<i32>} : memref<64x512xf32, #tpu.memory_space<vmem>>, vector<64x512xf32>,
    %cst_13 = arith.constant 0.000000e+00 : f32
    %17 = vector.broadcast %cst_13 : f32 to vector<16x128xf32>
    %cst_14 = arith.constant 0.000000e+00 : f32
    %18 = vector.broadcast %cst_14 : f32 to vector<16x128xf32>
    %c0_15 = arith.constant 0 : index
    %c0_16 = arith.constant 0 : index
    %19 = vector.load %arg14[%c0_15, %c0_16] : memref<64x512xf32, #tpu.memory_space<vmem>>, vector<16x512xf32>
    %cst_17 = arith.constant 1.000000e+00 : f32
    %20 = vector.broadcast %cst_17 : f32 to vector<16x128xf32>
    %21 = arith.cmpf ogt, %18, %20 : vector<16x128xf32>
    %22 = arith.extui %21 : vector<16x128xi1> to vector<16x128xi32>
    %23 = arith.sitofp %22 : vector<16x128xi32> to vector<16x128xf32>
    %24 = arith.truncf %18 : vector<16x128xf32> to vector<16x128xbf16>
    %c0_18 = arith.constant 0 : index
    %c0_19 = arith.constant 0 : index
    %25 = vector.load %arg4[%c0_18, %c0_19] : memref<128x512xbf16, #tpu.memory_space<vmem>>, vector<128x512xbf16>
    %cst_20 = arith.constant dense<0.000000e+00> : vector<16x512xf32>
    %26 = tpu.matmul %24, %25, %cst_20 {dimension_numbers = #tpu.dot_dimension_numbers<[1], [0], [0], [1], [0, 0, 1, 1], [], []>} : vector<16x128xbf16>, vector<128x512xbf16>, vector<16x512xf32> -> vector<16x512xf32>
    %27 = arith.addf %19, %26 : vector<16x512xf32>
    %28 = vector.extract_strided_slice %27 {offsets = [0, 0], sizes = [16, 128], strides = [1, 1]} : vector<16x512xf32> to vector<16x128xf32>
    %cst_21 = arith.constant 5.000000e-01 : f32
    %29 = vector.broadcast %cst_21 : f32 to vector<16x128xf32>
    %30 = arith.mulf %29, %28 : vector<16x128xf32>
    %31 = math.tanh %30 : vector<16x128xf32>
    %cst_22 = arith.constant 5.000000e-01 : f32
    %32 = vector.broadcast %cst_22 : f32 to vector<16x128xf32>
    %33 = arith.mulf %32, %31 : vector<16x128xf32>
    %cst_23 = arith.constant 5.000000e-01 : f32
    %34 = vector.broadcast %cst_23 : f32 to vector<16x128xf32>
    %35 = arith.addf %33, %34 : vector<16x128xf32>
    %36 = vector.extract_strided_slice %27 {offsets = [0, 128], sizes = [16, 128], strides = [1, 1]} : vector<16x512xf32> to vector<16x128xf32>
    %cst_24 = arith.constant 5.000000e-01 : f32
    %37 = vector.broadcast %cst_24 : f32 to vector<16x128xf32>
    %38 = arith.mulf %37, %36 : vector<16x128xf32>
    %39 = math.tanh %38 : vector<16x128xf32>
    %cst_25 = arith.constant 5.000000e-01 : f32
    %40 = vector.broadcast %cst_25 : f32 to vector<16x128xf32>
    %41 = arith.mulf %40, %39 : vector<16x128xf32>
    %cst_26 = arith.constant 5.000000e-01 : f32
    %42 = vector.broadcast %cst_26 : f32 to vector<16x128xf32>
    %43 = arith.addf %41, %42 : vector<16x128xf32>
    %44 = vector.extract_strided_slice %27 {offsets = [0, 256], sizes = [16, 128], strides = [1, 1]} : vector<16x512xf32> to vector<16x128xf32>
    %45 = math.tanh %44 : vector<16x128xf32>
    %46 = vector.extract_strided_slice %27 {offsets = [0, 384], sizes = [16, 128], strides = [1, 1]} : vector<16x512xf32> to vector<16x128xf32>
    %cst_27 = arith.constant 5.000000e-01 : f32
    %47 = vector.broadcast %cst_27 : f32 to vector<16x128xf32>
    %48 = arith.mulf %47, %46 : vector<16x128xf32>
    %49 = math.tanh %48 : vector<16x128xf32>
    %cst_28 = arith.constant 5.000000e-01 : f32
    %50 = vector.broadcast %cst_28 : f32 to vector<16x128xf32>
    %51 = arith.mulf %50, %49 : vector<16x128xf32>
    %cst_29 = arith.constant 5.000000e-01 : f32
    %52 = vector.broadcast %cst_29 : f32 to vector<16x128xf32>
    %53 = arith.addf %51, %52 : vector<16x128xf32>
    %54 = arith.mulf %43, %17 : vector<16x128xf32>
    %55 = arith.mulf %35, %45 : vector<16x128xf32>
    %56 = arith.addf %54, %55 : vector<16x128xf32>
    %57 = math.tanh %56 : vector<16x128xf32>
    %58 = arith.mulf %53, %57 : vector<16x128xf32>
    %cst_30 = arith.constant 1.000000e+00 : f32
    %59 = vector.broadcast %cst_30 : f32 to vector<16x128xf32>
    %60 = arith.mulf %23, %59 : vector<16x128xf32>
    %61 = arith.subf %58, %60 : vector<16x128xf32>
    %cst_31 = arith.constant 1.000000e+00 : f32
    %62 = vector.broadcast %cst_31 : f32 to vector<16x128xf32>
    %63 = arith.cmpf ogt, %61, %62 : vector<16x128xf32>
    %64 = arith.extui %63 : vector<16x128xi1> to vector<16x128xi32>
    %65 = arith.sitofp %64 : vector<16x128xi32> to vector<16x128xf32>
    %c0_32 = arith.constant 0 : index
    %c0_33 = arith.constant 0 : index
    %66 = vector.load %arg15[%c0_32, %c0_33] : memref<64x128xf32, #tpu.memory_space<vmem>>, vector<16x128xf32>
    tpu.vector_store %arg15[%c0_32, %c0_33], %65 {strides = array<i32>} : memref<64x128xf32, #tpu.memory_space<vmem>>, vector<16x128xf32>,
    %c16 = arith.constant 16 : index
    %c0_34 = arith.constant 0 : index
    %67 = vector.load %arg14[%c16, %c0_34] : memref<64x512xf32, #tpu.memory_space<vmem>>, vector<16x512xf32>
    %cst_35 = arith.constant 1.000000e+00 : f32
    %68 = vector.broadcast %cst_35 : f32 to vector<16x128xf32>
    %69 = arith.cmpf ogt, %61, %68 : vector<16x128xf32>
    %70 = arith.extui %69 : vector<16x128xi1> to vector<16x128xi32>
    %71 = arith.sitofp %70 : vector<16x128xi32> to vector<16x128xf32>
    %72 = arith.truncf %61 : vector<16x128xf32> to vector<16x128xbf16>
    %c0_36 = arith.constant 0 : index
    %c0_37 = arith.constant 0 : index
    %73 = vector.load %arg4[%c0_36, %c0_37] : memref<128x512xbf16, #tpu.memory_space<vmem>>, vector<128x512xbf16>
    %cst_38 = arith.constant dense<0.000000e+00> : vector<16x512xf32>
    %74 = tpu.matmul %72, %73, %cst_38 {dimension_numbers = #tpu.dot_dimension_numbers<[1], [0], [0], [1], [0, 0, 1, 1], [], []>} : vector<16x128xbf16>, vector<128x512xbf16>, vector<16x512xf32> -> vector<16x512xf32>
    %75 = arith.addf %67, %74 : vector<16x512xf32>
    %76 = vector.extract_strided_slice %75 {offsets = [0, 0], sizes = [16, 128], strides = [1, 1]} : vector<16x512xf32> to vector<16x128xf32>
    %cst_39 = arith.constant 5.000000e-01 : f32
    %77 = vector.broadcast %cst_39 : f32 to vector<16x128xf32>
    %78 = arith.mulf %77, %76 : vector<16x128xf32>
    %79 = math.tanh %78 : vector<16x128xf32>
    %cst_40 = arith.constant 5.000000e-01 : f32
    %80 = vector.broadcast %cst_40 : f32 to vector<16x128xf32>
    %81 = arith.mulf %80, %79 : vector<16x128xf32>
    %cst_41 = arith.constant 5.000000e-01 : f32
    %82 = vector.broadcast %cst_41 : f32 to vector<16x128xf32>
    %83 = arith.addf %81, %82 : vector<16x128xf32>
    %84 = vector.extract_strided_slice %75 {offsets = [0, 128], sizes = [16, 128], strides = [1, 1]} : vector<16x512xf32> to vector<16x128xf32>
    %cst_42 = arith.constant 5.000000e-01 : f32
    %85 = vector.broadcast %cst_42 : f32 to vector<16x128xf32>
    %86 = arith.mulf %85, %84 : vector<16x128xf32>
    %87 = math.tanh %86 : vector<16x128xf32>
    %cst_43 = arith.constant 5.000000e-01 : f32
    %88 = vector.broadcast %cst_43 : f32 to vector<16x128xf32>
    %89 = arith.mulf %88, %87 : vector<16x128xf32>
    %cst_44 = arith.constant 5.000000e-01 : f32
    %90 = vector.broadcast %cst_44 : f32 to vector<16x128xf32>
    %91 = arith.addf %89, %90 : vector<16x128xf32>
    %92 = vector.extract_strided_slice %75 {offsets = [0, 256], sizes = [16, 128], strides = [1, 1]} : vector<16x512xf32> to vector<16x128xf32>
    %93 = math.tanh %92 : vector<16x128xf32>
    %94 = vector.extract_strided_slice %75 {offsets = [0, 384], sizes = [16, 128], strides = [1, 1]} : vector<16x512xf32> to vector<16x128xf32>
    %cst_45 = arith.constant 5.000000e-01 : f32
    %95 = vector.broadcast %cst_45 : f32 to vector<16x128xf32>
    %96 = arith.mulf %95, %94 : vector<16x128xf32>
    %97 = math.tanh %96 : vector<16x128xf32>
    %cst_46 = arith.constant 5.000000e-01 : f32
    %98 = vector.broadcast %cst_46 : f32 to vector<16x128xf32>
    %99 = arith.mulf %98, %97 : vector<16x128xf32>
    %cst_47 = arith.constant 5.000000e-01 : f32
    %100 = vector.broadcast %cst_47 : f32 to vector<16x128xf32>
    %101 = arith.addf %99, %100 : vector<16x128xf32>
    %102 = arith.mulf %91, %56 : vector<16x128xf32>
    %103 = arith.mulf %83, %93 : vector<16x128xf32>
    %104 = arith.addf %102, %103 : vector<16x128xf32>
    %105 = math.tanh %104 : vector<16x128xf32>
    %106 = arith.mulf %101, %105 : vector<16x128xf32>
    %cst_48 = arith.constant 1.000000e+00 : f32
    %107 = vector.broadcast %cst_48 : f32 to vector<16x128xf32>
    %108 = arith.mulf %71, %107 : vector<16x128xf32>
    %109 = arith.subf %106, %108 : vector<16x128xf32>
    %cst_49 = arith.constant 1.000000e+00 : f32
    %110 = vector.broadcast %cst_49 : f32 to vector<16x128xf32>
    %111 = arith.cmpf ogt, %109, %110 : vector<16x128xf32>
    %112 = arith.extui %111 : vector<16x128xi1> to vector<16x128xi32>
    %113 = arith.sitofp %112 : vector<16x128xi32> to vector<16x128xf32>
    %c16_50 = arith.constant 16 : index
    %c0_51 = arith.constant 0 : index
    %114 = vector.load %arg15[%c16_50, %c0_51] : memref<64x128xf32, #tpu.memory_space<vmem>>, vector<16x128xf32>
    tpu.vector_store %arg15[%c16_50, %c0_51], %113 {strides = array<i32>} : memref<64x128xf32, #tpu.memory_space<vmem>>, vector<16x128xf32>,
    %c32 = arith.constant 32 : index
    %c0_52 = arith.constant 0 : index
    %115 = vector.load %arg14[%c32, %c0_52] : memref<64x512xf32, #tpu.memory_space<vmem>>, vector<16x512xf32>
    %cst_53 = arith.constant 1.000000e+00 : f32
    %116 = vector.broadcast %cst_53 : f32 to vector<16x128xf32>
    %117 = arith.cmpf ogt, %109, %116 : vector<16x128xf32>
    %118 = arith.extui %117 : vector<16x128xi1> to vector<16x128xi32>
    %119 = arith.sitofp %118 : vector<16x128xi32> to vector<16x128xf32>
    %120 = arith.truncf %109 : vector<16x128xf32> to vector<16x128xbf16>
    %c0_54 = arith.constant 0 : index
    %c0_55 = arith.constant 0 : index
    %121 = vector.load %arg4[%c0_54, %c0_55] : memref<128x512xbf16, #tpu.memory_space<vmem>>, vector<128x512xbf16>
    %cst_56 = arith.constant dense<0.000000e+00> : vector<16x512xf32>
    %122 = tpu.matmul %120, %121, %cst_56 {dimension_numbers = #tpu.dot_dimension_numbers<[1], [0], [0], [1], [0, 0, 1, 1], [], []>} : vector<16x128xbf16>, vector<128x512xbf16>, vector<16x512xf32> -> vector<16x512xf32>
    %123 = arith.addf %115, %122 : vector<16x512xf32>
    %124 = vector.extract_strided_slice %123 {offsets = [0, 0], sizes = [16, 128], strides = [1, 1]} : vector<16x512xf32> to vector<16x128xf32>
    %cst_57 = arith.constant 5.000000e-01 : f32
    %125 = vector.broadcast %cst_57 : f32 to vector<16x128xf32>
    %126 = arith.mulf %125, %124 : vector<16x128xf32>
    %127 = math.tanh %126 : vector<16x128xf32>
    %cst_58 = arith.constant 5.000000e-01 : f32
    %128 = vector.broadcast %cst_58 : f32 to vector<16x128xf32>
    %129 = arith.mulf %128, %127 : vector<16x128xf32>
    %cst_59 = arith.constant 5.000000e-01 : f32
    %130 = vector.broadcast %cst_59 : f32 to vector<16x128xf32>
    %131 = arith.addf %129, %130 : vector<16x128xf32>
    %132 = vector.extract_strided_slice %123 {offsets = [0, 128], sizes = [16, 128], strides = [1, 1]} : vector<16x512xf32> to vector<16x128xf32>
    %cst_60 = arith.constant 5.000000e-01 : f32
    %133 = vector.broadcast %cst_60 : f32 to vector<16x128xf32>
    %134 = arith.mulf %133, %132 : vector<16x128xf32>
    %135 = math.tanh %134 : vector<16x128xf32>
    %cst_61 = arith.constant 5.000000e-01 : f32
    %136 = vector.broadcast %cst_61 : f32 to vector<16x128xf32>
    %137 = arith.mulf %136, %135 : vector<16x128xf32>
    %cst_62 = arith.constant 5.000000e-01 : f32
    %138 = vector.broadcast %cst_62 : f32 to vector<16x128xf32>
    %139 = arith.addf %137, %138 : vector<16x128xf32>
    %140 = vector.extract_strided_slice %123 {offsets = [0, 256], sizes = [16, 128], strides = [1, 1]} : vector<16x512xf32> to vector<16x128xf32>
    %141 = math.tanh %140 : vector<16x128xf32>
    %142 = vector.extract_strided_slice %123 {offsets = [0, 384], sizes = [16, 128], strides = [1, 1]} : vector<16x512xf32> to vector<16x128xf32>
    %cst_63 = arith.constant 5.000000e-01 : f32
    %143 = vector.broadcast %cst_63 : f32 to vector<16x128xf32>
    %144 = arith.mulf %143, %142 : vector<16x128xf32>
    %145 = math.tanh %144 : vector<16x128xf32>
    %cst_64 = arith.constant 5.000000e-01 : f32
    %146 = vector.broadcast %cst_64 : f32 to vector<16x128xf32>
    %147 = arith.mulf %146, %145 : vector<16x128xf32>
    %cst_65 = arith.constant 5.000000e-01 : f32
    %148 = vector.broadcast %cst_65 : f32 to vector<16x128xf32>
    %149 = arith.addf %147, %148 : vector<16x128xf32>
    %150 = arith.mulf %139, %104 : vector<16x128xf32>
    %151 = arith.mulf %131, %141 : vector<16x128xf32>
    %152 = arith.addf %150, %151 : vector<16x128xf32>
    %153 = math.tanh %152 : vector<16x128xf32>
    %154 = arith.mulf %149, %153 : vector<16x128xf32>
    %cst_66 = arith.constant 1.000000e+00 : f32
    %155 = vector.broadcast %cst_66 : f32 to vector<16x128xf32>
    %156 = arith.mulf %119, %155 : vector<16x128xf32>
    %157 = arith.subf %154, %156 : vector<16x128xf32>
    %cst_67 = arith.constant 1.000000e+00 : f32
    %158 = vector.broadcast %cst_67 : f32 to vector<16x128xf32>
    %159 = arith.cmpf ogt, %157, %158 : vector<16x128xf32>
    %160 = arith.extui %159 : vector<16x128xi1> to vector<16x128xi32>
    %161 = arith.sitofp %160 : vector<16x128xi32> to vector<16x128xf32>
    %c32_68 = arith.constant 32 : index
    %c0_69 = arith.constant 0 : index
    %162 = vector.load %arg15[%c32_68, %c0_69] : memref<64x128xf32, #tpu.memory_space<vmem>>, vector<16x128xf32>
    tpu.vector_store %arg15[%c32_68, %c0_69], %161 {strides = array<i32>} : memref<64x128xf32, #tpu.memory_space<vmem>>, vector<16x128xf32>,
    %c48 = arith.constant 48 : index
    %c0_70 = arith.constant 0 : index
    %163 = vector.load %arg14[%c48, %c0_70] : memref<64x512xf32, #tpu.memory_space<vmem>>, vector<16x512xf32>
    %cst_71 = arith.constant 1.000000e+00 : f32
    %164 = vector.broadcast %cst_71 : f32 to vector<16x128xf32>
    %165 = arith.cmpf ogt, %157, %164 : vector<16x128xf32>
    %166 = arith.extui %165 : vector<16x128xi1> to vector<16x128xi32>
    %167 = arith.sitofp %166 : vector<16x128xi32> to vector<16x128xf32>
    %168 = arith.truncf %157 : vector<16x128xf32> to vector<16x128xbf16>
    %c0_72 = arith.constant 0 : index
    %c0_73 = arith.constant 0 : index
    %169 = vector.load %arg4[%c0_72, %c0_73] : memref<128x512xbf16, #tpu.memory_space<vmem>>, vector<128x512xbf16>
    %cst_74 = arith.constant dense<0.000000e+00> : vector<16x512xf32>
    %170 = tpu.matmul %168, %169, %cst_74 {dimension_numbers = #tpu.dot_dimension_numbers<[1], [0], [0], [1], [0, 0, 1, 1], [], []>} : vector<16x128xbf16>, vector<128x512xbf16>, vector<16x512xf32> -> vector<16x512xf32>
    %171 = arith.addf %163, %170 : vector<16x512xf32>
    %172 = vector.extract_strided_slice %171 {offsets = [0, 0], sizes = [16, 128], strides = [1, 1]} : vector<16x512xf32> to vector<16x128xf32>
    %cst_75 = arith.constant 5.000000e-01 : f32
    %173 = vector.broadcast %cst_75 : f32 to vector<16x128xf32>
    %174 = arith.mulf %173, %172 : vector<16x128xf32>
    %175 = math.tanh %174 : vector<16x128xf32>
    %cst_76 = arith.constant 5.000000e-01 : f32
    %176 = vector.broadcast %cst_76 : f32 to vector<16x128xf32>
    %177 = arith.mulf %176, %175 : vector<16x128xf32>
    %cst_77 = arith.constant 5.000000e-01 : f32
    %178 = vector.broadcast %cst_77 : f32 to vector<16x128xf32>
    %179 = arith.addf %177, %178 : vector<16x128xf32>
    %180 = vector.extract_strided_slice %171 {offsets = [0, 128], sizes = [16, 128], strides = [1, 1]} : vector<16x512xf32> to vector<16x128xf32>
    %cst_78 = arith.constant 5.000000e-01 : f32
    %181 = vector.broadcast %cst_78 : f32 to vector<16x128xf32>
    %182 = arith.mulf %181, %180 : vector<16x128xf32>
    %183 = math.tanh %182 : vector<16x128xf32>
    %cst_79 = arith.constant 5.000000e-01 : f32
    %184 = vector.broadcast %cst_79 : f32 to vector<16x128xf32>
    %185 = arith.mulf %184, %183 : vector<16x128xf32>
    %cst_80 = arith.constant 5.000000e-01 : f32
    %186 = vector.broadcast %cst_80 : f32 to vector<16x128xf32>
    %187 = arith.addf %185, %186 : vector<16x128xf32>
    %188 = vector.extract_strided_slice %171 {offsets = [0, 256], sizes = [16, 128], strides = [1, 1]} : vector<16x512xf32> to vector<16x128xf32>
    %189 = math.tanh %188 : vector<16x128xf32>
    %190 = vector.extract_strided_slice %171 {offsets = [0, 384], sizes = [16, 128], strides = [1, 1]} : vector<16x512xf32> to vector<16x128xf32>
    %cst_81 = arith.constant 5.000000e-01 : f32
    %191 = vector.broadcast %cst_81 : f32 to vector<16x128xf32>
    %192 = arith.mulf %191, %190 : vector<16x128xf32>
    %193 = math.tanh %192 : vector<16x128xf32>
    %cst_82 = arith.constant 5.000000e-01 : f32
    %194 = vector.broadcast %cst_82 : f32 to vector<16x128xf32>
    %195 = arith.mulf %194, %193 : vector<16x128xf32>
    %cst_83 = arith.constant 5.000000e-01 : f32
    %196 = vector.broadcast %cst_83 : f32 to vector<16x128xf32>
    %197 = arith.addf %195, %196 : vector<16x128xf32>
    %198 = arith.mulf %187, %152 : vector<16x128xf32>
    %199 = arith.mulf %179, %189 : vector<16x128xf32>
    %200 = arith.addf %198, %199 : vector<16x128xf32>
    %201 = math.tanh %200 : vector<16x128xf32>
    %202 = arith.mulf %197, %201 : vector<16x128xf32>
    %cst_84 = arith.constant 1.000000e+00 : f32
    %203 = vector.broadcast %cst_84 : f32 to vector<16x128xf32>
    %204 = arith.mulf %167, %203 : vector<16x128xf32>
    %205 = arith.subf %202, %204 : vector<16x128xf32>
    %cst_85 = arith.constant 1.000000e+00 : f32
    %206 = vector.broadcast %cst_85 : f32 to vector<16x128xf32>
    %207 = arith.cmpf ogt, %205, %206 : vector<16x128xf32>
    %208 = arith.extui %207 : vector<16x128xi1> to vector<16x128xi32>
    %209 = arith.sitofp %208 : vector<16x128xi32> to vector<16x128xf32>
    %c48_86 = arith.constant 48 : index
    %c0_87 = arith.constant 0 : index
    %210 = vector.load %arg15[%c48_86, %c0_87] : memref<64x128xf32, #tpu.memory_space<vmem>>, vector<16x128xf32>
    tpu.vector_store %arg15[%c48_86, %c0_87], %209 {strides = array<i32>} : memref<64x128xf32, #tpu.memory_space<vmem>>, vector<16x128xf32>,
    %c0_88 = arith.constant 0 : index
    %c0_89 = arith.constant 0 : index
    %211 = vector.load %arg15[%c0_88, %c0_89] : memref<64x128xf32, #tpu.memory_space<vmem>>, vector<64x128xf32>
    %cst_90 = arith.constant dense<0.000000e+00> : vector<128xf32>
    %212 = vector.multi_reduction <add>, %211, %cst_90 [0] : vector<64x128xf32> to vector<128xf32>
    %213 = vector.shape_cast %212 : vector<128xf32> to vector<1x128xf32>
    %cst_91 = arith.constant 1.562500e-02 : f32
    %214 = vector.broadcast %cst_91 : f32 to vector<1x128xf32>
    %215 = arith.mulf %213, %214 : vector<1x128xf32>
    %216 = arith.mulf %215, %215 : vector<1x128xf32>
    %217 = arith.subf %215, %216 : vector<1x128xf32>
    %cst_92 = arith.constant 9.99999974E-6 : f32
    %218 = vector.broadcast %cst_92 : f32 to vector<1x128xf32>
    %219 = arith.addf %217, %218 : vector<1x128xf32>
    %220 = math.rsqrt %219 : vector<1x128xf32>
    %c0_93 = arith.constant 0 : index
    %c0_94 = arith.constant 0 : index
    %221 = vector.load %arg9[%c0_93, %c0_94] : memref<1x128xf32, #tpu.memory_space<vmem>>, vector<1x128xf32>
    %222 = arith.mulf %221, %220 : vector<1x128xf32>
    %c0_95 = arith.constant 0 : index
    %c0_96 = arith.constant 0 : index
    %223 = vector.load %arg10[%c0_95, %c0_96] : memref<1x128xf32, #tpu.memory_space<vmem>>, vector<1x128xf32>
    %224 = arith.mulf %215, %222 : vector<1x128xf32>
    %225 = arith.subf %223, %224 : vector<1x128xf32>
    %226 = vector.broadcast %222 : vector<1x128xf32> to vector<64x128xf32>
    %227 = arith.mulf %211, %226 : vector<64x128xf32>
    %228 = vector.broadcast %225 : vector<1x128xf32> to vector<64x128xf32>
    %229 = arith.addf %227, %228 : vector<64x128xf32>
    %230 = arith.truncf %229 : vector<64x128xf32> to vector<64x128xbf16>
    %c0_97 = arith.constant 0 : index
    %c0_98 = arith.constant 0 : index
    %231 = vector.load %arg6[%c0_97, %c0_98] : memref<128x512xbf16, #tpu.memory_space<vmem>>, vector<128x512xbf16>
    %cst_99 = arith.constant dense<0.000000e+00> : vector<64x512xf32>
    %232 = tpu.matmul %230, %231, %cst_99 {dimension_numbers = #tpu.dot_dimension_numbers<[1], [0], [0], [1], [0, 0, 1, 1], [], []>} : vector<64x128xbf16>, vector<128x512xbf16>, vector<64x512xf32> -> vector<64x512xf32>
    %c0_100 = arith.constant 0 : index
    %c0_101 = arith.constant 0 : index
    %233 = vector.load %arg8[%c0_100, %c0_101] : memref<1x512xf32, #tpu.memory_space<vmem>>, vector<1x512xf32>
    %234 = vector.broadcast %233 : vector<1x512xf32> to vector<64x512xf32>
    %235 = arith.addf %232, %234 : vector<64x512xf32>
    %c0_102 = arith.constant 0 : index
    %c0_103 = arith.constant 0 : index
    %236 = vector.load %arg14[%c0_102, %c0_103] : memref<64x512xf32, #tpu.memory_space<vmem>>, vector<64x512xf32>
    tpu.vector_store %arg14[%c0_102, %c0_103], %235 {strides = array<i32>} : memref<64x512xf32, #tpu.memory_space<vmem>>, vector<64x512xf32>,
    %cst_104 = arith.constant 0.000000e+00 : f32
    %237 = vector.broadcast %cst_104 : f32 to vector<16x128xf32>
    %cst_105 = arith.constant 0.000000e+00 : f32
    %238 = vector.broadcast %cst_105 : f32 to vector<16x128xf32>
    %cst_106 = arith.constant 0.000000e+00 : f32
    %239 = vector.broadcast %cst_106 : f32 to vector<16x128xf32>
    %c0_107 = arith.constant 0 : index
    %c0_108 = arith.constant 0 : index
    %240 = vector.load %arg14[%c0_107, %c0_108] : memref<64x512xf32, #tpu.memory_space<vmem>>, vector<16x512xf32>
    %cst_109 = arith.constant 1.000000e+00 : f32
    %241 = vector.broadcast %cst_109 : f32 to vector<16x128xf32>
    %242 = arith.cmpf ogt, %238, %241 : vector<16x128xf32>
    %243 = arith.extui %242 : vector<16x128xi1> to vector<16x128xi32>
    %244 = arith.sitofp %243 : vector<16x128xi32> to vector<16x128xf32>
    %245 = arith.truncf %238 : vector<16x128xf32> to vector<16x128xbf16>
    %c0_110 = arith.constant 0 : index
    %c0_111 = arith.constant 0 : index
    %246 = vector.load %arg7[%c0_110, %c0_111] : memref<128x512xbf16, #tpu.memory_space<vmem>>, vector<128x512xbf16>
    %cst_112 = arith.constant dense<0.000000e+00> : vector<16x512xf32>
    %247 = tpu.matmul %245, %246, %cst_112 {dimension_numbers = #tpu.dot_dimension_numbers<[1], [0], [0], [1], [0, 0, 1, 1], [], []>} : vector<16x128xbf16>, vector<128x512xbf16>, vector<16x512xf32> -> vector<16x512xf32>
    %248 = arith.addf %240, %247 : vector<16x512xf32>
    %249 = vector.extract_strided_slice %248 {offsets = [0, 0], sizes = [16, 128], strides = [1, 1]} : vector<16x512xf32> to vector<16x128xf32>
    %cst_113 = arith.constant 5.000000e-01 : f32
    %250 = vector.broadcast %cst_113 : f32 to vector<16x128xf32>
    %251 = arith.mulf %250, %249 : vector<16x128xf32>
    %252 = math.tanh %251 : vector<16x128xf32>
    %cst_114 = arith.constant 5.000000e-01 : f32
    %253 = vector.broadcast %cst_114 : f32 to vector<16x128xf32>
    %254 = arith.mulf %253, %252 : vector<16x128xf32>
    %cst_115 = arith.constant 5.000000e-01 : f32
    %255 = vector.broadcast %cst_115 : f32 to vector<16x128xf32>
    %256 = arith.addf %254, %255 : vector<16x128xf32>
    %257 = vector.extract_strided_slice %248 {offsets = [0, 128], sizes = [16, 128], strides = [1, 1]} : vector<16x512xf32> to vector<16x128xf32>
    %cst_116 = arith.constant 5.000000e-01 : f32
    %258 = vector.broadcast %cst_116 : f32 to vector<16x128xf32>
    %259 = arith.mulf %258, %257 : vector<16x128xf32>
    %260 = math.tanh %259 : vector<16x128xf32>
    %cst_117 = arith.constant 5.000000e-01 : f32
    %261 = vector.broadcast %cst_117 : f32 to vector<16x128xf32>
    %262 = arith.mulf %261, %260 : vector<16x128xf32>
    %cst_118 = arith.constant 5.000000e-01 : f32
    %263 = vector.broadcast %cst_118 : f32 to vector<16x128xf32>
    %264 = arith.addf %262, %263 : vector<16x128xf32>
    %265 = vector.extract_strided_slice %248 {offsets = [0, 256], sizes = [16, 128], strides = [1, 1]} : vector<16x512xf32> to vector<16x128xf32>
    %266 = math.tanh %265 : vector<16x128xf32>
    %267 = vector.extract_strided_slice %248 {offsets = [0, 384], sizes = [16, 128], strides = [1, 1]} : vector<16x512xf32> to vector<16x128xf32>
    %cst_119 = arith.constant 5.000000e-01 : f32
    %268 = vector.broadcast %cst_119 : f32 to vector<16x128xf32>
    %269 = arith.mulf %268, %267 : vector<16x128xf32>
    %270 = math.tanh %269 : vector<16x128xf32>
    %cst_120 = arith.constant 5.000000e-01 : f32
    %271 = vector.broadcast %cst_120 : f32 to vector<16x128xf32>
    %272 = arith.mulf %271, %270 : vector<16x128xf32>
    %cst_121 = arith.constant 5.000000e-01 : f32
    %273 = vector.broadcast %cst_121 : f32 to vector<16x128xf32>
    %274 = arith.addf %272, %273 : vector<16x128xf32>
    %275 = arith.mulf %264, %237 : vector<16x128xf32>
    %276 = arith.mulf %256, %266 : vector<16x128xf32>
    %277 = arith.addf %275, %276 : vector<16x128xf32>
    %278 = math.tanh %277 : vector<16x128xf32>
    %279 = arith.mulf %274, %278 : vector<16x128xf32>
    %cst_122 = arith.constant 1.000000e+00 : f32
    %280 = vector.broadcast %cst_122 : f32 to vector<16x128xf32>
    %281 = arith.mulf %244, %280 : vector<16x128xf32>
    %282 = arith.subf %279, %281 : vector<16x128xf32>
    %283 = arith.addf %239, %282 : vector<16x128xf32>
    %c16_123 = arith.constant 16 : index
    %c0_124 = arith.constant 0 : index
    %284 = vector.load %arg14[%c16_123, %c0_124] : memref<64x512xf32, #tpu.memory_space<vmem>>, vector<16x512xf32>
    %cst_125 = arith.constant 1.000000e+00 : f32
    %285 = vector.broadcast %cst_125 : f32 to vector<16x128xf32>
    %286 = arith.cmpf ogt, %282, %285 : vector<16x128xf32>
    %287 = arith.extui %286 : vector<16x128xi1> to vector<16x128xi32>
    %288 = arith.sitofp %287 : vector<16x128xi32> to vector<16x128xf32>
    %289 = arith.truncf %282 : vector<16x128xf32> to vector<16x128xbf16>
    %c0_126 = arith.constant 0 : index
    %c0_127 = arith.constant 0 : index
    %290 = vector.load %arg7[%c0_126, %c0_127] : memref<128x512xbf16, #tpu.memory_space<vmem>>, vector<128x512xbf16>
    %cst_128 = arith.constant dense<0.000000e+00> : vector<16x512xf32>
    %291 = tpu.matmul %289, %290, %cst_128 {dimension_numbers = #tpu.dot_dimension_numbers<[1], [0], [0], [1], [0, 0, 1, 1], [], []>} : vector<16x128xbf16>, vector<128x512xbf16>, vector<16x512xf32> -> vector<16x512xf32>
    %292 = arith.addf %284, %291 : vector<16x512xf32>
    %293 = vector.extract_strided_slice %292 {offsets = [0, 0], sizes = [16, 128], strides = [1, 1]} : vector<16x512xf32> to vector<16x128xf32>
    %cst_129 = arith.constant 5.000000e-01 : f32
    %294 = vector.broadcast %cst_129 : f32 to vector<16x128xf32>
    %295 = arith.mulf %294, %293 : vector<16x128xf32>
    %296 = math.tanh %295 : vector<16x128xf32>
    %cst_130 = arith.constant 5.000000e-01 : f32
    %297 = vector.broadcast %cst_130 : f32 to vector<16x128xf32>
    %298 = arith.mulf %297, %296 : vector<16x128xf32>
    %cst_131 = arith.constant 5.000000e-01 : f32
    %299 = vector.broadcast %cst_131 : f32 to vector<16x128xf32>
    %300 = arith.addf %298, %299 : vector<16x128xf32>
    %301 = vector.extract_strided_slice %292 {offsets = [0, 128], sizes = [16, 128], strides = [1, 1]} : vector<16x512xf32> to vector<16x128xf32>
    %cst_132 = arith.constant 5.000000e-01 : f32
    %302 = vector.broadcast %cst_132 : f32 to vector<16x128xf32>
    %303 = arith.mulf %302, %301 : vector<16x128xf32>
    %304 = math.tanh %303 : vector<16x128xf32>
    %cst_133 = arith.constant 5.000000e-01 : f32
    %305 = vector.broadcast %cst_133 : f32 to vector<16x128xf32>
    %306 = arith.mulf %305, %304 : vector<16x128xf32>
    %cst_134 = arith.constant 5.000000e-01 : f32
    %307 = vector.broadcast %cst_134 : f32 to vector<16x128xf32>
    %308 = arith.addf %306, %307 : vector<16x128xf32>
    %309 = vector.extract_strided_slice %292 {offsets = [0, 256], sizes = [16, 128], strides = [1, 1]} : vector<16x512xf32> to vector<16x128xf32>
    %310 = math.tanh %309 : vector<16x128xf32>
    %311 = vector.extract_strided_slice %292 {offsets = [0, 384], sizes = [16, 128], strides = [1, 1]} : vector<16x512xf32> to vector<16x128xf32>
    %cst_135 = arith.constant 5.000000e-01 : f32
    %312 = vector.broadcast %cst_135 : f32 to vector<16x128xf32>
    %313 = arith.mulf %312, %311 : vector<16x128xf32>
    %314 = math.tanh %313 : vector<16x128xf32>
    %cst_136 = arith.constant 5.000000e-01 : f32
    %315 = vector.broadcast %cst_136 : f32 to vector<16x128xf32>
    %316 = arith.mulf %315, %314 : vector<16x128xf32>
    %cst_137 = arith.constant 5.000000e-01 : f32
    %317 = vector.broadcast %cst_137 : f32 to vector<16x128xf32>
    %318 = arith.addf %316, %317 : vector<16x128xf32>
    %319 = arith.mulf %308, %277 : vector<16x128xf32>
    %320 = arith.mulf %300, %310 : vector<16x128xf32>
    %321 = arith.addf %319, %320 : vector<16x128xf32>
    %322 = math.tanh %321 : vector<16x128xf32>
    %323 = arith.mulf %318, %322 : vector<16x128xf32>
    %cst_138 = arith.constant 1.000000e+00 : f32
    %324 = vector.broadcast %cst_138 : f32 to vector<16x128xf32>
    %325 = arith.mulf %288, %324 : vector<16x128xf32>
    %326 = arith.subf %323, %325 : vector<16x128xf32>
    %327 = arith.addf %283, %326 : vector<16x128xf32>
    %c32_139 = arith.constant 32 : index
    %c0_140 = arith.constant 0 : index
    %328 = vector.load %arg14[%c32_139, %c0_140] : memref<64x512xf32, #tpu.memory_space<vmem>>, vector<16x512xf32>
    %cst_141 = arith.constant 1.000000e+00 : f32
    %329 = vector.broadcast %cst_141 : f32 to vector<16x128xf32>
    %330 = arith.cmpf ogt, %326, %329 : vector<16x128xf32>
    %331 = arith.extui %330 : vector<16x128xi1> to vector<16x128xi32>
    %332 = arith.sitofp %331 : vector<16x128xi32> to vector<16x128xf32>
    %333 = arith.truncf %326 : vector<16x128xf32> to vector<16x128xbf16>
    %c0_142 = arith.constant 0 : index
    %c0_143 = arith.constant 0 : index
    %334 = vector.load %arg7[%c0_142, %c0_143] : memref<128x512xbf16, #tpu.memory_space<vmem>>, vector<128x512xbf16>
    %cst_144 = arith.constant dense<0.000000e+00> : vector<16x512xf32>
    %335 = tpu.matmul %333, %334, %cst_144 {dimension_numbers = #tpu.dot_dimension_numbers<[1], [0], [0], [1], [0, 0, 1, 1], [], []>} : vector<16x128xbf16>, vector<128x512xbf16>, vector<16x512xf32> -> vector<16x512xf32>
    %336 = arith.addf %328, %335 : vector<16x512xf32>
    %337 = vector.extract_strided_slice %336 {offsets = [0, 0], sizes = [16, 128], strides = [1, 1]} : vector<16x512xf32> to vector<16x128xf32>
    %cst_145 = arith.constant 5.000000e-01 : f32
    %338 = vector.broadcast %cst_145 : f32 to vector<16x128xf32>
    %339 = arith.mulf %338, %337 : vector<16x128xf32>
    %340 = math.tanh %339 : vector<16x128xf32>
    %cst_146 = arith.constant 5.000000e-01 : f32
    %341 = vector.broadcast %cst_146 : f32 to vector<16x128xf32>
    %342 = arith.mulf %341, %340 : vector<16x128xf32>
    %cst_147 = arith.constant 5.000000e-01 : f32
    %343 = vector.broadcast %cst_147 : f32 to vector<16x128xf32>
    %344 = arith.addf %342, %343 : vector<16x128xf32>
    %345 = vector.extract_strided_slice %336 {offsets = [0, 128], sizes = [16, 128], strides = [1, 1]} : vector<16x512xf32> to vector<16x128xf32>
    %cst_148 = arith.constant 5.000000e-01 : f32
    %346 = vector.broadcast %cst_148 : f32 to vector<16x128xf32>
    %347 = arith.mulf %346, %345 : vector<16x128xf32>
    %348 = math.tanh %347 : vector<16x128xf32>
    %cst_149 = arith.constant 5.000000e-01 : f32
    %349 = vector.broadcast %cst_149 : f32 to vector<16x128xf32>
    %350 = arith.mulf %349, %348 : vector<16x128xf32>
    %cst_150 = arith.constant 5.000000e-01 : f32
    %351 = vector.broadcast %cst_150 : f32 to vector<16x128xf32>
    %352 = arith.addf %350, %351 : vector<16x128xf32>
    %353 = vector.extract_strided_slice %336 {offsets = [0, 256], sizes = [16, 128], strides = [1, 1]} : vector<16x512xf32> to vector<16x128xf32>
    %354 = math.tanh %353 : vector<16x128xf32>
    %355 = vector.extract_strided_slice %336 {offsets = [0, 384], sizes = [16, 128], strides = [1, 1]} : vector<16x512xf32> to vector<16x128xf32>
    %cst_151 = arith.constant 5.000000e-01 : f32
    %356 = vector.broadcast %cst_151 : f32 to vector<16x128xf32>
    %357 = arith.mulf %356, %355 : vector<16x128xf32>
    %358 = math.tanh %357 : vector<16x128xf32>
    %cst_152 = arith.constant 5.000000e-01 : f32
    %359 = vector.broadcast %cst_152 : f32 to vector<16x128xf32>
    %360 = arith.mulf %359, %358 : vector<16x128xf32>
    %cst_153 = arith.constant 5.000000e-01 : f32
    %361 = vector.broadcast %cst_153 : f32 to vector<16x128xf32>
    %362 = arith.addf %360, %361 : vector<16x128xf32>
    %363 = arith.mulf %352, %321 : vector<16x128xf32>
    %364 = arith.mulf %344, %354 : vector<16x128xf32>
    %365 = arith.addf %363, %364 : vector<16x128xf32>
    %366 = math.tanh %365 : vector<16x128xf32>
    %367 = arith.mulf %362, %366 : vector<16x128xf32>
    %cst_154 = arith.constant 1.000000e+00 : f32
    %368 = vector.broadcast %cst_154 : f32 to vector<16x128xf32>
    %369 = arith.mulf %332, %368 : vector<16x128xf32>
    %370 = arith.subf %367, %369 : vector<16x128xf32>
    %371 = arith.addf %327, %370 : vector<16x128xf32>
    %c48_155 = arith.constant 48 : index
    %c0_156 = arith.constant 0 : index
    %372 = vector.load %arg14[%c48_155, %c0_156] : memref<64x512xf32, #tpu.memory_space<vmem>>, vector<16x512xf32>
    %cst_157 = arith.constant 1.000000e+00 : f32
    %373 = vector.broadcast %cst_157 : f32 to vector<16x128xf32>
    %374 = arith.cmpf ogt, %370, %373 : vector<16x128xf32>
    %375 = arith.extui %374 : vector<16x128xi1> to vector<16x128xi32>
    %376 = arith.sitofp %375 : vector<16x128xi32> to vector<16x128xf32>
    %377 = arith.truncf %370 : vector<16x128xf32> to vector<16x128xbf16>
    %c0_158 = arith.constant 0 : index
    %c0_159 = arith.constant 0 : index
    %378 = vector.load %arg7[%c0_158, %c0_159] : memref<128x512xbf16, #tpu.memory_space<vmem>>, vector<128x512xbf16>
    %cst_160 = arith.constant dense<0.000000e+00> : vector<16x512xf32>
    %379 = tpu.matmul %377, %378, %cst_160 {dimension_numbers = #tpu.dot_dimension_numbers<[1], [0], [0], [1], [0, 0, 1, 1], [], []>} : vector<16x128xbf16>, vector<128x512xbf16>, vector<16x512xf32> -> vector<16x512xf32>
    %380 = arith.addf %372, %379 : vector<16x512xf32>
    %381 = vector.extract_strided_slice %380 {offsets = [0, 0], sizes = [16, 128], strides = [1, 1]} : vector<16x512xf32> to vector<16x128xf32>
    %cst_161 = arith.constant 5.000000e-01 : f32
    %382 = vector.broadcast %cst_161 : f32 to vector<16x128xf32>
    %383 = arith.mulf %382, %381 : vector<16x128xf32>
    %384 = math.tanh %383 : vector<16x128xf32>
    %cst_162 = arith.constant 5.000000e-01 : f32
    %385 = vector.broadcast %cst_162 : f32 to vector<16x128xf32>
    %386 = arith.mulf %385, %384 : vector<16x128xf32>
    %cst_163 = arith.constant 5.000000e-01 : f32
    %387 = vector.broadcast %cst_163 : f32 to vector<16x128xf32>
    %388 = arith.addf %386, %387 : vector<16x128xf32>
    %389 = vector.extract_strided_slice %380 {offsets = [0, 128], sizes = [16, 128], strides = [1, 1]} : vector<16x512xf32> to vector<16x128xf32>
    %cst_164 = arith.constant 5.000000e-01 : f32
    %390 = vector.broadcast %cst_164 : f32 to vector<16x128xf32>
    %391 = arith.mulf %390, %389 : vector<16x128xf32>
    %392 = math.tanh %391 : vector<16x128xf32>
    %cst_165 = arith.constant 5.000000e-01 : f32
    %393 = vector.broadcast %cst_165 : f32 to vector<16x128xf32>
    %394 = arith.mulf %393, %392 : vector<16x128xf32>
    %cst_166 = arith.constant 5.000000e-01 : f32
    %395 = vector.broadcast %cst_166 : f32 to vector<16x128xf32>
    %396 = arith.addf %394, %395 : vector<16x128xf32>
    %397 = vector.extract_strided_slice %380 {offsets = [0, 256], sizes = [16, 128], strides = [1, 1]} : vector<16x512xf32> to vector<16x128xf32>
    %398 = math.tanh %397 : vector<16x128xf32>
    %399 = vector.extract_strided_slice %380 {offsets = [0, 384], sizes = [16, 128], strides = [1, 1]} : vector<16x512xf32> to vector<16x128xf32>
    %cst_167 = arith.constant 5.000000e-01 : f32
    %400 = vector.broadcast %cst_167 : f32 to vector<16x128xf32>
    %401 = arith.mulf %400, %399 : vector<16x128xf32>
    %402 = math.tanh %401 : vector<16x128xf32>
    %cst_168 = arith.constant 5.000000e-01 : f32
    %403 = vector.broadcast %cst_168 : f32 to vector<16x128xf32>
    %404 = arith.mulf %403, %402 : vector<16x128xf32>
    %cst_169 = arith.constant 5.000000e-01 : f32
    %405 = vector.broadcast %cst_169 : f32 to vector<16x128xf32>
    %406 = arith.addf %404, %405 : vector<16x128xf32>
    %407 = arith.mulf %396, %365 : vector<16x128xf32>
    %408 = arith.mulf %388, %398 : vector<16x128xf32>
    %409 = arith.addf %407, %408 : vector<16x128xf32>
    %410 = math.tanh %409 : vector<16x128xf32>
    %411 = arith.mulf %406, %410 : vector<16x128xf32>
    %cst_170 = arith.constant 1.000000e+00 : f32
    %412 = vector.broadcast %cst_170 : f32 to vector<16x128xf32>
    %413 = arith.mulf %376, %412 : vector<16x128xf32>
    %414 = arith.subf %411, %413 : vector<16x128xf32>
    %415 = arith.addf %371, %414 : vector<16x128xf32>
    %cst_171 = arith.constant 2.500000e-01 : f32
    %416 = vector.broadcast %cst_171 : f32 to vector<16x128xf32>
    %417 = arith.mulf %415, %416 : vector<16x128xf32>
    %418 = arith.truncf %417 : vector<16x128xf32> to vector<16x128xbf16>
    %c0_172 = arith.constant 0 : index
    %c0_173 = arith.constant 0 : index
    %419 = vector.load %arg11[%c0_172, %c0_173] : memref<128x8xbf16, #tpu.memory_space<vmem>>, vector<128x8xbf16>
    %cst_174 = arith.constant dense<0.000000e+00> : vector<16x8xf32>
    %420 = tpu.matmul %418, %419, %cst_174 {dimension_numbers = #tpu.dot_dimension_numbers<[1], [0], [0], [1], [0, 0, 1, 1], [], []>} : vector<16x128xbf16>, vector<128x8xbf16>, vector<16x8xf32> -> vector<16x8xf32>
    %c0_175 = arith.constant 0 : index
    %c0_176 = arith.constant 0 : index
    %421 = vector.load %arg12[%c0_175, %c0_176] : memref<1x8xf32, #tpu.memory_space<vmem>>, vector<1x8xf32>
    %422 = vector.broadcast %421 : vector<1x8xf32> to vector<16x8xf32>
    %423 = arith.addf %420, %422 : vector<16x8xf32>
    %c0_177 = arith.constant 0 : index
    %c0_178 = arith.constant 0 : index
    %424 = vector.load %arg13[%c0_177, %c0_178] : memref<16x8xf32, #tpu.memory_space<vmem>>, vector<16x8xf32>
    tpu.vector_store %arg13[%c0_177, %c0_178], %423 {strides = array<i32>} : memref<16x8xf32, #tpu.memory_space<vmem>>, vector<16x8xf32>,
    return
  }
}

</mosaic_0001>

<bundles_post_ra>
// kernel: net_slstm_conv_forward.1
= control target key start
LH: loop header
LB: loop body
LE: loop exit
PB: predicated region body
PF: predicated region fallthrough
CT: control target
= control target key end

     0   :  { %18 = vsyncpa [#allocation5], 0  ;;  %s5402_s0 = inlined_call_operand.vmem [shape: bf16[64,128], index: 0, kind: input, shape index: {}]   ;;  %s5403_s1 = inlined_call_operand.vmem [shape: bf16[128,128], index: 1, kind: input, shape index: {}]   ;;  %s5404_s2 = inlined_call_operand.vmem [shape: f32[1,128], index: 2, kind: input, shape index: {}]   ;;  %s5405_s3 = inlined_call_operand.vmem [shape: bf16[128,512], index: 3, kind: input, shape index: {}]   ;;  %s5406_s4 = inlined_call_operand.vmem [shape: bf16[128,512], index: 4, kind: input, shape index: {}]   ;;  %s5407_s5 = inlined_call_operand.vmem [shape: f32[1,512], index: 5, kind: input, shape index: {}]   ;;  %s5408_s6 = inlined_call_operand.hbm [shape: bf16[128,512], index: 6, kind: input, shape index: {}]   ;;  %s5409_s7 = inlined_call_operand.hbm [shape: bf16[128,512], index: 7, kind: input, shape index: {}]   ;;  %s5410_s8 = inlined_call_operand.vmem [shape: f32[1,512], index: 8, kind: input, shape index: {}]   ;;  %s5411_s9 = inlined_call_operand.vmem [shape: f32[1,128], index: 9, kind: input, shape index: {}]   ;;  %s5412_s10 = inlined_call_operand.vmem [shape: f32[1,128], index: 10, kind: input, shape index: {}]   ;;  %s5413_s11 = inlined_call_operand.vmem [shape: bf16[128,8], index: 11, kind: input, shape index: {}]   ;;  %s5414_s12 = inlined_call_operand.vmem [shape: f32[1,8], index: 12, kind: input, shape index: {}]   ;;  %s5415_s13 = inlined_call_operand.vmem [shape: f32[16,8], index: 13, kind: output, shape index: {}]  }
   0x1   :  { %19 = vsyncpa [#allocation7], 0  ;;  %s4300_s25 = smov [#allocation4]   ;;  %s4252_s29 = scalar_lea.hbm %s5408_s6, 4096 }
   0x2   :  { %s37_s26 = sshll.u32 %s4300_s25, 4  ;;  %p4253_p0 = scmp.ne.s32.totalorder %s5408_s6, %s4252_s29  ;;  %s38_s26 = int_to_ptr.vmem [resolvable:$true] %s37_s26 }
   0x3   :  { %p4256_p1 = scmp.lt.u32.totalorder %s4252_s29, %s5408_s6 }
   0x5   :  { %p4258_p2 = pnand %p4256_p1, %p4253_p0 }
   0x7   :  { %4261 = shalt.err (!%p4258_p2)
}
   0x8   :  { %s4262_s17 = scalar_lea.vmem %s38_s26, 4096  ;;  %p4267_p4 = scmp.lt.s32.totalorder %s38_s26, %s38_s26 }
   0x9   :  { %p4263_p3 = scmp.ne.s32.totalorder %s38_s26, %s4262_s17  ;;  %p4268_p5 = scmp.lt.s32.totalorder %s4262_s17, %s4262_s17 }
   0xb   :  { %p4269_p6 = por %p4268_p5, %p4267_p4 }
   0xd   :  { %p4270_p7 = pnand %p4269_p6, %p4263_p3 }
   0xf   :  { %4273 = shalt.err (!%p4270_p7)
}
  0x10   :  { %s4301_s18 = smov 256   ;;  %s4302_s19 = smov 16  }
  0x11   :  { %43 = dma.hbm_to_vmem [thread:$0]  %s5408_s6, 4096, %s38_s26, [#allocation5], %s4301_s18, %s4301_s18, %s4302_s19  }
  0x12   :  { %s4303_s22 = smov [#allocation6]   ;;  %s4274_s27 = scalar_lea.hbm %s5409_s7, 4096 }
  0x13   :  { %s49_s23 = sshll.u32 %s4303_s22, 4  ;;  %p4275_p8 = scmp.ne.s32.totalorder %s5409_s7, %s4274_s27  ;;  %s50_s23 = int_to_ptr.vmem [resolvable:$true] %s49_s23 }
  0x14   :  { %p4278_p9 = scmp.lt.u32.totalorder %s4274_s27, %s5409_s7 }
  0x16   :  { %p4280_p10 = pnand %p4278_p9, %p4275_p8 }
  0x18   :  { %4283 = shalt.err (!%p4280_p10)
}
  0x19   :  { %s4284_s15 = scalar_lea.vmem %s50_s23, 4096  ;;  %p4289_p12 = scmp.lt.s32.totalorder %s50_s23, %s50_s23 }
  0x1a   :  { %p4285_p11 = scmp.ne.s32.totalorder %s50_s23, %s4284_s15  ;;  %p4290_p13 = scmp.lt.s32.totalorder %s4284_s15, %s4284_s15 }
  0x1c   :  { %p4291_p0 = por %p4290_p13, %p4289_p12 }
  0x1e   :  { %p4292_p1 = pnand %p4291_p0, %p4285_p11 }
  0x20   :  { %4295 = shalt.err (!%p4292_p1)
}
  0x21   :  { %55 = dma.hbm_to_vmem [thread:$0]  %s5409_s7, 4096, %s50_s23, [#allocation7], %s4301_s18, %s4301_s18, %s4302_s19  }
  0x22   :  { %4296 = dma.done.wait [#allocation5], 4096  }
  0x23   :  { %4297 = vsyncadd [#allocation5], 4294963200 }
  0x24   :  { %4298 = dma.done.wait [#allocation7], 4096  }
  0x25   :  { %4299 = vsyncadd [#allocation7], 4294963200  ;;  %v3872_v0 = vld [vmem:[%s5403_s1] sm:$0xff]   ;;  %v3873_v1 = vld [vmem:[%s5403_s1 + $0x8] sm:$0xff]   ;;  %v4304_v46 = vmov 0  }
  0x26   :  { %3692 = vmatprep.subr.bf16.mxu0 %v3872_v0  ;;  %v3874_v2 = vld [vmem:[%s5403_s1 + $0x10] sm:$0xff]   ;;  %v3875_v3 = vld [vmem:[%s5403_s1 + $0x18] sm:$0xff]   ;;  %v3880_v4 = vld [vmem:[%s5402_s0] sm:$0xff]   ;;  %515 = vmatprep.mubr.bf16.mxu1 %v4304_v46  ;;  %v4305_v61 = vmov 1.0|1.0  }
  0x27   :  { %3693 = vmatpush3.bf16.msra.mxu0 %v3872_v0  ;;  %3708 = vmatprep.mubr.bf16.mxu0 %v3880_v4  ;;  %v3876_v5 = vld [vmem:[%s5403_s1 + $0x20] sm:$0xff]   ;;  %v3877_v10 = vld [vmem:[%s5403_s1 + $0x28] sm:$0xff]   ;;  %v3878_v12 = vld [vmem:[%s5403_s1 + $0x30] sm:$0xff]  }
  0x28   :  { %3694 = vmatprep.subr.bf16.mxu0 %v3873_v1  ;;  %v3884_v6 = vld [vmem:[%s5405_s3 + $0x4] ss:$16 sps:$4 sm:$0xff]   ;;  %v3886_v7 = vld [vmem:[%s5405_s3] ss:$16 sps:$4 sm:$0xff]   ;;  %v3879_v15 = vld [vmem:[%s5403_s1 + $0x38] sm:$0xff]  }
  0x29   :  { %483 = vmatprep.subr.bf16.mxu1 %v3884_v6  ;;  %v3890_v8 = vld [vmem:[%s5405_s3 + $0x24] ss:$16 sps:$4 sm:$0xff]   ;;  %v3892_v9 = vld [vmem:[%s5405_s3 + $0x20] ss:$16 sps:$4 sm:$0xff]   ;;  %v3889_v18 = vld [vmem:[%s5405_s3 + $0xc] ss:$16 sps:$4 sm:$0xff]  }
  0x2a   :  { %484 = vmatpush1.bf16.msra.mxu1 %v3886_v7  ;;  %v3896_v11 = vld [vmem:[%s5405_s3 + $0x44] ss:$16 sps:$4 sm:$0xff]   ;;  %v3898_v13 = vld [vmem:[%s5405_s3 + $0x40] ss:$16 sps:$4 sm:$0xff]   ;;  %v3881_v20 = vld [vmem:[%s5402_s0 + $0x8] sm:$0xff]  }
  0x2b   :  { %3695 = vmatpush3.bf16.msra.mxu0 %v3873_v1  ;;  %485 = vmatprep.subr.bf16.mxu1 %v3890_v8  ;;  %v3902_v14 = vld [vmem:[%s5405_s3 + $0x64] ss:$16 sps:$4 sm:$0xff]   ;;  %v3904_v16 = vld [vmem:[%s5405_s3 + $0x60] ss:$16 sps:$4 sm:$0xff]   ;;  %v3887_v23 = vld [vmem:[%s5405_s3 + $0x8] ss:$16 sps:$4 sm:$0xff]  }
  0x2c   :  { %3696 = vmatprep.subr.bf16.mxu0 %v3874_v2  ;;  %v3908_v17 = vld [vmem:[%s5405_s3 + $0x84] ss:$16 sps:$4 sm:$0xff]   ;;  %v3910_v19 = vld [vmem:[%s5405_s3 + $0x80] ss:$16 sps:$4 sm:$0xff]   ;;  %v3895_v24 = vld [vmem:[%s5405_s3 + $0x2c] ss:$16 sps:$4 sm:$0xff]  }
  0x2d   :  { %v3914_v21 = vld [vmem:[%s5405_s3 + $0xa4] ss:$16 sps:$4 sm:$0xff]   ;;  %v3916_v25 = vld [vmem:[%s5405_s3 + $0xa0] ss:$16 sps:$4 sm:$0xff]   ;;  %v3893_v27 = vld [vmem:[%s5405_s3 + $0x28] ss:$16 sps:$4 sm:$0xff]  }
  0x2e   :  { %486 = vmatpush1.bf16.msra.mxu1 %v3892_v9  ;;  %v3882_v22 = vld [vmem:[%s5402_s0 + $0x10] sm:$0xff]   ;;  %v3901_v28 = vld [vmem:[%s5405_s3 + $0x4c] ss:$16 sps:$4 sm:$0xff]   ;;  %v3899_v30 = vld [vmem:[%s5405_s3 + $0x48] ss:$16 sps:$4 sm:$0xff]  }
  0x2f   :  { %3697 = vmatpush3.bf16.msra.mxu0 %v3874_v2  ;;  %487 = vmatprep.subr.bf16.mxu1 %v3896_v11  ;;  %v3920_v26 = vld [vmem:[%s5405_s3 + $0xc4] ss:$16 sps:$4 sm:$0xff]   ;;  %v3883_v29 = vld [vmem:[%s5402_s0 + $0x18] sm:$0xff]   ;;  %v3922_v38 = vld [vmem:[%s5405_s3 + $0xc0] ss:$16 sps:$4 sm:$0xff]  }
  0x30   :  { %3698 = vmatprep.subr.bf16.mxu0 %v3875_v3  ;;  %v3907_v31 = vld [vmem:[%s5405_s3 + $0x6c] ss:$16 sps:$4 sm:$0xff]   ;;  %v3905_v32 = vld [vmem:[%s5405_s3 + $0x68] ss:$16 sps:$4 sm:$0xff]   ;;  %v3926_v40 = vld [vmem:[%s5405_s3 + $0xe4] ss:$16 sps:$4 sm:$0xff]  }
  0x31   :  { %v3913_v33 = vld [vmem:[%s5405_s3 + $0x8c] ss:$16 sps:$4 sm:$0xff]   ;;  %v3911_v34 = vld [vmem:[%s5405_s3 + $0x88] ss:$16 sps:$4 sm:$0xff]   ;;  %v3928_v42 = vld [vmem:[%s5405_s3 + $0xe0] ss:$16 sps:$4 sm:$0xff]  }
  0x32   :  { %488 = vmatpush1.bf16.msra.mxu1 %v3898_v13  ;;  %v3919_v35 = vld [vmem:[%s5405_s3 + $0xac] ss:$16 sps:$4 sm:$0xff]   ;;  %v3917_v36 = vld [vmem:[%s5405_s3 + $0xa8] ss:$16 sps:$4 sm:$0xff]   ;;  %v4537_v44 = vld [vmem:[%s5406_s4 + $0x4] ss:$16 sps:$4 sm:$0xff]  }
  0x33   :  { %3699 = vmatpush3.bf16.msra.mxu0 %v3875_v3  ;;  %489 = vmatprep.subr.bf16.mxu1 %v3902_v14  ;;  %v3925_v37 = vld [vmem:[%s5405_s3 + $0xcc] ss:$16 sps:$4 sm:$0xff]   ;;  %v3923_v39 = vld [vmem:[%s5405_s3 + $0xc8] ss:$16 sps:$4 sm:$0xff]   ;;  %v3387_v47 = vld [vmem:[%s5404_s2] ss:$0 sm:$0xff] }
  0x34   :  { %3700 = vmatprep.subr.bf16.mxu0 %v3876_v5  ;;  %v3931_v41 = vld [vmem:[%s5405_s3 + $0xec] ss:$16 sps:$4 sm:$0xff]   ;;  %v3929_v43 = vld [vmem:[%s5405_s3 + $0xe8] ss:$16 sps:$4 sm:$0xff]   ;;  %v4554_v56 = vld [vmem:[%s5406_s4] ss:$16 sps:$4 sm:$0xff]  }
  0x35   :  { %v4542_v45 = vld [vmem:[%s5406_s4 + $0xc] ss:$16 sps:$4 sm:$0xff]   ;;  %v4559_v57 = vld [vmem:[%s5406_s4 + $0x8] ss:$16 sps:$4 sm:$0xff]   ;;  %v4568_v59 = vld [vmem:[%s5406_s4 + $0x24] ss:$16 sps:$4 sm:$0xff]  }
  0x36   :  { %490 = vmatpush1.bf16.msra.mxu1 %v3904_v16  ;;  %v4573_v60 = vld [vmem:[%s5406_s4 + $0x2c] ss:$16 sps:$4 sm:$0xff]   ;;  %v4582_v63 = vld [vmem:[%s5406_s4 + $0x20] ss:$16 sps:$4 sm:$0xff]   ;;  %v4587_v0 = vld [vmem:[%s5406_s4 + $0x28] ss:$16 sps:$4 sm:$0xff]  }
  0x37   :  { %3701 = vmatpush3.bf16.msra.mxu0 %v3876_v5  ;;  %491 = vmatprep.subr.bf16.mxu1 %v3908_v17  ;;  %v4594_v5 = vld [vmem:[%s5406_s4 + $0x44] ss:$16 sps:$4 sm:$0xff]   ;;  %v4599_v6 = vld [vmem:[%s5406_s4 + $0x4c] ss:$16 sps:$4 sm:$0xff]   ;;  %v4613_v11 = vld [vmem:[%s5406_s4 + $0x48] ss:$16 sps:$4 sm:$0xff]  }
  0x38   :  { %3702 = vmatprep.subr.bf16.mxu0 %v3877_v10  ;;  %v4624_v13 = vld [vmem:[%s5406_s4 + $0x64] ss:$16 sps:$4 sm:$0xff]   ;;  %v4629_v14 = vld [vmem:[%s5406_s4 + $0x6c] ss:$16 sps:$4 sm:$0xff]   ;;  %v4646_v16 = vld [vmem:[%s5406_s4 + $0x60] ss:$16 sps:$4 sm:$0xff]  }
  0x39   :  { %v4651_v17 = vld [vmem:[%s5406_s4 + $0x68] ss:$16 sps:$4 sm:$0xff]  }
  0x3a   :  { %492 = vmatpush1.bf16.msra.mxu1 %v3910_v19  ;;  %v4663_v19 = vld [vmem:[%s5406_s4 + $0x8c] ss:$16 sps:$4 sm:$0xff]  }
  0x3b   :  { %3703 = vmatpush3.bf16.msra.mxu0 %v3877_v10  ;;  %493 = vmatprep.subr.bf16.mxu1 %v3914_v21  ;;  %v4608_v10 = vld [vmem:[%s5406_s4 + $0x40] ss:$16 sps:$4 sm:$0xff]   ;;  %v4677_v21 = vld [vmem:[%s5406_s4 + $0x88] ss:$16 sps:$4 sm:$0xff]  }
  0x3c   :  { %3704 = vmatprep.subr.bf16.mxu0 %v3878_v12 }
  0x3e   :  { %494 = vmatpush1.bf16.msra.mxu1 %v3916_v25  ;;  %v4707_v25 = vld [vmem:[%s5406_s4 + $0xa8] ss:$16 sps:$4 sm:$0xff]  }
  0x3f   :  { %3705 = vmatpush3.bf16.msra.mxu0 %v3878_v12  ;;  %495 = vmatprep.subr.bf16.mxu1 %v3920_v26  ;;  %v4714_v26 = vld [vmem:[%s5406_s4 + $0xc4] ss:$16 sps:$4 sm:$0xff]  }
  0x40   :  { %3706 = vmatprep.subr.bf16.mxu0 %v3879_v15 }
  0x42   :  { %496 = vmatpush1.bf16.msra.mxu1 %v3922_v38 }
  0x43   :  { %3707 = vmatpush3.bf16.msra.mxu0 %v3879_v15  ;;  %497 = vmatprep.subr.bf16.mxu1 %v3926_v40 }
  0x44   :  { %556 = vmatprep.subr.bf16.mxu0 %v3889_v18  ;;  %v4658_v18 = vld [vmem:[%s5406_s4 + $0x84] ss:$16 sps:$4 sm:$0xff]  }
  0x46   :  { %3709 = vmatmul.mubr.bf16.vlgmr.msra.gmra.mrb[0].mxu0 %v3881_v20  ;;  %498 = vmatpush1.bf16.msra.mxu1 %v3928_v42  ;;  %v4672_v20 = vld [vmem:[%s5406_s4 + $0x80] ss:$16 sps:$4 sm:$0xff]  }
  0x47   :  { %3712 = vmatprep.mubr.bf16.mxu0 %v3882_v22  ;;  %557 = vmatpush1.bf16.msra.mxu0 %v3887_v23  ;;  %v4684_v22 = vld [vmem:[%s5406_s4 + $0xa4] ss:$16 sps:$4 sm:$0xff]   ;;  %v4689_v23 = vld [vmem:[%s5406_s4 + $0xac] ss:$16 sps:$4 sm:$0xff]  }
  0x48   :  { %558 = vmatprep.subr.bf16.mxu0 %v3895_v24  ;;  %864 = vmatprep.subr.bf16.mxu1 %v4537_v44  ;;  %v4702_v24 = vld [vmem:[%s5406_s4 + $0xa0] ss:$16 sps:$4 sm:$0xff]  }
  0x4b   :  { %559 = vmatpush1.bf16.msra.mxu0 %v3893_v27  ;;  %v4719_v27 = vld [vmem:[%s5406_s4 + $0xcc] ss:$16 sps:$4 sm:$0xff]  }
  0x4c   :  { %560 = vmatprep.subr.bf16.mxu0 %v3901_v28  ;;  %v4728_v28 = vld [vmem:[%s5406_s4 + $0xc0] ss:$16 sps:$4 sm:$0xff]  }
  0x4e   :  { %3713 = vmatmul.mubr.bf16.gmra.mrb[4].mxu0 %v3883_v29  ;;  %v4733_v29 = vld [vmem:[%s5406_s4 + $0xc8] ss:$16 sps:$4 sm:$0xff]  }
  0x4f   :  { %561 = vmatpush1.bf16.msra.mxu0 %v3899_v30  ;;  %588 = vmatprep.mubr.bf16.mxu0 %v4304_v46  ;;  %v4740_v30 = vld [vmem:[%s5406_s4 + $0xe4] ss:$16 sps:$4 sm:$0xff]  }
  0x50   :  { %562 = vmatprep.subr.bf16.mxu0 %v3907_v31  ;;  %v4745_v31 = vld [vmem:[%s5406_s4 + $0xec] ss:$16 sps:$4 sm:$0xff]  }
  0x53   :  { %563 = vmatpush1.bf16.msra.mxu0 %v3905_v32  ;;  %v4758_v32 = vld [vmem:[%s5406_s4 + $0xe0] ss:$16 sps:$4 sm:$0xff]  }
  0x54   :  { %564 = vmatprep.subr.bf16.mxu0 %v3913_v33  ;;  %v4763_v33 = vld [vmem:[%s5406_s4 + $0xe8] ss:$16 sps:$4 sm:$0xff]  }
  0x57   :  { %565 = vmatpush1.bf16.msra.mxu0 %v3911_v34  ;;  %v303_v34 = vlaneseq }
  0x58   :  { %566 = vmatprep.subr.bf16.mxu0 %v3919_v35 }
  0x59   :  { %v4809_v35 = vshrl.u32 %v303_v34, 7 }
  0x5b   :  { %567 = vmatpush1.bf16.msra.mxu0 %v3917_v36  ;;  %v4812_v36 = vsub.s32 0, %v4809_v35  ;;  %v309_v38 = vsub.s32 1, %v4809_v35  ;;  %v313_v40 = vsub.s32 2, %v4809_v35 }
  0x5c   :  { %568 = vmatprep.subr.bf16.mxu0 %v3925_v37  ;;  %v301_v37 = vld [vmem:[%s5407_s5] sm:$0xf] }
  0x5f   :  { %569 = vmatpush1.bf16.msra.mxu0 %v3923_v39  ;;  %v4819_v39 = vrot.slane %v301_v37, %v4812_v36 }
  0x60   :  { %570 = vmatprep.subr.bf16.mxu0 %v3931_v41  ;;  %v4824_v41 = vrot.slane %v301_v37, %v309_v38 }
  0x63   :  { %571 = vmatpush1.bf16.msra.mxu0 %v3929_v43 }
  0x64   :  { %907 = vmatprep.subr.bf16.mxu0 %v4542_v45 }
 0x119   :  { %v3710_v48 = vpop.f32.mrb[0].mxu0 }
 0x11a   :  { %v219_v49 = vadd.f32 %v3710_v48, %v3387_v47  ;;  %v210_v50 = vpop.f32.mrb[1].mxu0 }
 0x11b   :  { %v211_v51 = vadd.f32 %v3387_v47, %v210_v50  ;;  %v3711_v52 = vpop.f32.mrb[2].mxu0 }
 0x11c   :  { %v222_v53 = vadd.f32 %v3711_v52, %v3387_v47  ;;  %v213_v54 = vpop.f32.mrb[3].mxu0  ;;  %vm243_vm0 = vcmp.gt.f32.partialorder %v219_v49, 1.0 }
 0x11d   :  { %v214_v55 = vadd.f32 %v3387_v47, %v213_v54  ;;  %vm241_vm2 = vcmp.gt.f32.partialorder %v211_v51, 1.0 }
 0x11e   :  { %vm244_vm1 = vcmp.gt.f32.partialorder %v222_v53, 1.0 }
 0x11f   :  { %vm4561_vm3 = vmpackc.low %vm244_vm1, %vm243_vm0  ;;  %vm242_vm4 = vcmp.gt.f32.partialorder %v214_v55, 1.0 }
 0x120   :  { %vm3440_vm5 = vmpackc.low %vm242_vm4, %vm241_vm2 }
 0x121   :  { %3441 = vmatmul.mubr.msk.bf16.vlgmr.msra.gmra.mrb[0].mxu1 %vm3440_vm5, %v4305_v61  ;;  %3449 = vmatmul.mubr.msk.bf16.vlgmr.msra.gmra.mrb[8].mxu0 %vm3440_vm5, %v4305_v61  ;;  %v3714_v62 = vpop.f32.mrb[4].mxu0 }
 0x122   :  { %865 = vmatpush1.bf16.msra.mxu1 %v4554_v56  ;;  %908 = vmatpush1.bf16.msra.mxu0 %v4559_v57  ;;  %v235_v1 = vadd.f32 %v3714_v62, %v3387_v47  ;;  %v226_v2 = vpop.f32.mrb[5].mxu0  ;;  %v317_v62 = vsub.s32 3, %v4809_v35 }
 0x123   :  { %866 = vmatprep.subr.bf16.mxu1 %v4568_v59  ;;  %909 = vmatprep.subr.bf16.mxu0 %v4573_v60  ;;  %v227_v3 = vadd.f32 %v3387_v47, %v226_v2  ;;  %v3715_v4 = vpop.f32.mrb[6].mxu0 }
 0x124   :  { %vm247_vm6 = vcmp.gt.f32.partialorder %v235_v1, 1.0  ;;  %v238_v7 = vadd.f32 %v3715_v4, %v3387_v47  ;;  %525 = vmatprep.mubr.bf16.mxu1 %v4304_v46  ;;  %598 = vmatprep.mubr.bf16.mxu0 %v4304_v46  ;;  %v229_v8 = vpop.f32.mrb[7].mxu0 }
 0x125   :  { %vm245_vm7 = vcmp.gt.f32.partialorder %v227_v3, 1.0  ;;  %v230_v9 = vadd.f32 %v3387_v47, %v229_v8  ;;  %v4829_v47 = vrot.slane %v301_v37, %v313_v40 }
 0x126   :  { %867 = vmatpush1.bf16.msra.mxu1 %v4582_v63  ;;  %910 = vmatpush1.bf16.msra.mxu0 %v4587_v0  ;;  %vm248_vm8 = vcmp.gt.f32.partialorder %v238_v7, 1.0  ;;  %v4838_v7 = vrot.slane %v301_v37, %v317_v62 }
 0x127   :  { %vm4615_vm9 = vmpackc.low %vm248_vm8, %vm247_vm6  ;;  %868 = vmatprep.subr.bf16.mxu1 %v4594_v5  ;;  %vm246_vm10 = vcmp.gt.f32.partialorder %v230_v9, 1.0  ;;  %911 = vmatprep.subr.bf16.mxu0 %v4599_v6  ;;  %vm4307_vm8 = vmmov 0  }
 0x128   :  { %vm4631_vm11 = vmpackc.low %vm246_vm10, %vm245_vm7 }
 0x129   :  { %3443 = vmatmul.mubr.msk.bf16.gmra.mrb[4].mxu1 %vm4561_vm3, %v4305_v61  ;;  %3451 = vmatmul.mubr.msk.bf16.gmra.mrb[12].mxu0 %vm4561_vm3, %v4305_v61 }
 0x12a   :  { %869 = vmatpush1.bf16.msra.mxu1 %v4608_v10  ;;  %912 = vmatpush1.bf16.msra.mxu0 %v4613_v11 }
 0x12b   :  { %870 = vmatprep.subr.bf16.mxu1 %v4624_v13  ;;  %913 = vmatprep.subr.bf16.mxu0 %v4629_v14 }
 0x12c   :  { %535 = vmatprep.mubr.bf16.mxu1 %v4304_v46  ;;  %608 = vmatprep.mubr.bf16.mxu0 %v4304_v46 }
 0x12e   :  { %871 = vmatpush1.bf16.msra.mxu1 %v4646_v16  ;;  %914 = vmatpush1.bf16.msra.mxu0 %v4651_v17 }
 0x12f   :  { %872 = vmatprep.subr.bf16.mxu1 %v4658_v18  ;;  %915 = vmatprep.subr.bf16.mxu0 %v4663_v19 }
 0x131   :  { %3445 = vmatmul.mubr.msk.bf16.gmra.mrb[8].mxu1 %vm4631_vm11, %v4305_v61  ;;  %3453 = vmatmul.mubr.msk.bf16.gmra.mrb[16].mxu0 %vm4631_vm11, %v4305_v61  ;;  %vm3378_vm11 = vcmask 64512  }
 0x132   :  { %873 = vmatpush1.bf16.msra.mxu1 %v4672_v20  ;;  %916 = vmatpush1.bf16.msra.mxu0 %v4677_v21 }
 0x133   :  { %874 = vmatprep.subr.bf16.mxu1 %v4684_v22  ;;  %917 = vmatprep.subr.bf16.mxu0 %v4689_v23 }
 0x134   :  { %545 = vmatprep.mubr.bf16.mxu1 %v4304_v46  ;;  %618 = vmatprep.mubr.bf16.mxu0 %v4304_v46 }
 0x136   :  { %875 = vmatpush1.bf16.msra.mxu1 %v4702_v24  ;;  %918 = vmatpush1.bf16.msra.mxu0 %v4707_v25 }
 0x137   :  { %876 = vmatprep.subr.bf16.mxu1 %v4714_v26  ;;  %919 = vmatprep.subr.bf16.mxu0 %v4719_v27 }
 0x139   :  { %3447 = vmatmul.mubr.msk.bf16.gmra.mrb[12].mxu1 %vm4615_vm9, %v4305_v61  ;;  %3455 = vmatmul.mubr.msk.bf16.gmra.mrb[20].mxu0 %vm4615_vm9, %v4305_v61 }
 0x13a   :  { %877 = vmatpush1.bf16.msra.mxu1 %v4728_v28  ;;  %920 = vmatpush1.bf16.msra.mxu0 %v4733_v29 }
 0x13b   :  { %878 = vmatprep.subr.bf16.mxu1 %v4740_v30  ;;  %921 = vmatprep.subr.bf16.mxu0 %v4745_v31 }
 0x13c   :  { %896 = vmatprep.mubr.bf16.mxu1 %v4304_v46  ;;  %939 = vmatprep.mubr.bf16.mxu0 %v4304_v46 }
 0x13e   :  { %879 = vmatpush1.bf16.msra.mxu1 %v4758_v32  ;;  %922 = vmatpush1.bf16.msra.mxu0 %v4763_v33 }
 0x13f   :  { %1205 = vmatprep.subr.bf16.mxu1 %v4537_v44  ;;  %1248 = vmatprep.subr.bf16.mxu0 %v4542_v45 }
 0x141   :  { %897 = vmatmul.mubr.bf16.vlgmr.msra.gmra.mrb[0].mxu1 %v4304_v46  ;;  %940 = vmatmul.mubr.bf16.vlgmr.msra.gmra.mrb[8].mxu0 %v4304_v46 }
 0x142   :  { %1206 = vmatpush1.bf16.msra.mxu1 %v4554_v56  ;;  %1249 = vmatpush1.bf16.msra.mxu0 %v4559_v57 }
 0x143   :  { %1207 = vmatprep.subr.bf16.mxu1 %v4568_v59  ;;  %1250 = vmatprep.subr.bf16.mxu0 %v4573_v60 }
 0x144   :  { %1237 = vmatprep.mubr.bf16.mxu1 %v4304_v46  ;;  %1280 = vmatprep.mubr.bf16.mxu0 %v4304_v46 }
 0x146   :  { %1208 = vmatpush1.bf16.msra.mxu1 %v4582_v63  ;;  %1251 = vmatpush1.bf16.msra.mxu0 %v4587_v0 }
 0x147   :  { %1209 = vmatprep.subr.bf16.mxu1 %v4594_v5  ;;  %1252 = vmatprep.subr.bf16.mxu0 %v4599_v6 }
 0x14a   :  { %1210 = vmatpush1.bf16.msra.mxu1 %v4608_v10  ;;  %1253 = vmatpush1.bf16.msra.mxu0 %v4613_v11 }
 0x14b   :  { %1211 = vmatprep.subr.bf16.mxu1 %v4624_v13  ;;  %1254 = vmatprep.subr.bf16.mxu0 %v4629_v14 }
 0x14e   :  { %1212 = vmatpush1.bf16.msra.mxu1 %v4646_v16  ;;  %1255 = vmatpush1.bf16.msra.mxu0 %v4651_v17 }
 0x14f   :  { %1213 = vmatprep.subr.bf16.mxu1 %v4658_v18  ;;  %1256 = vmatprep.subr.bf16.mxu0 %v4663_v19 }
 0x152   :  { %1214 = vmatpush1.bf16.msra.mxu1 %v4672_v20  ;;  %1257 = vmatpush1.bf16.msra.mxu0 %v4677_v21 }
 0x153   :  { %1215 = vmatprep.subr.bf16.mxu1 %v4684_v22  ;;  %1258 = vmatprep.subr.bf16.mxu0 %v4689_v23 }
 0x156   :  { %1216 = vmatpush1.bf16.msra.mxu1 %v4702_v24  ;;  %1259 = vmatpush1.bf16.msra.mxu0 %v4707_v25 }
 0x157   :  { %1217 = vmatprep.subr.bf16.mxu1 %v4714_v26  ;;  %1260 = vmatprep.subr.bf16.mxu0 %v4719_v27 }
 0x15a   :  { %1218 = vmatpush1.bf16.msra.mxu1 %v4728_v28  ;;  %1261 = vmatpush1.bf16.msra.mxu0 %v4733_v29 }
 0x15b   :  { %1219 = vmatprep.subr.bf16.mxu1 %v4740_v30  ;;  %1262 = vmatprep.subr.bf16.mxu0 %v4745_v31 }
 0x15e   :  { %1220 = vmatpush1.bf16.msra.mxu1 %v4758_v32  ;;  %1263 = vmatpush1.bf16.msra.mxu0 %v4763_v33 }
 0x15f   :  { %1546 = vmatprep.subr.bf16.mxu1 %v4537_v44  ;;  %1589 = vmatprep.subr.bf16.mxu0 %v4542_v45 }
 0x214   :  { %v898_v42 = vpop.f32.mrb[0].mxu1  ;;  %v941_v43 = vpop.f32.mrb[8].mxu0 }
 0x215   :  { %v3736_v44 = vadd.f32 %v898_v42, %v4819_v39  ;;  %v900_v48 = vpop.f32.mrb[1].mxu1  ;;  %v943_v49 = vpop.f32.mrb[9].mxu0  ;;  %v3752_v2 = vadd.f32 %v941_v43, %v4829_v47 }
 0x216   :  { %v3737_v50 = vadd.f32 %v900_v48, %v4824_v41  ;;  %v902_v51 = vpop.f32.mrb[2].mxu1  ;;  %v945_v52 = vpop.f32.mrb[10].mxu0  ;;  %v3753_v9 = vadd.f32 %v943_v49, %v4838_v7 }
 0x217   :  { %v958_v53 = vmul.f32 0.5, %v3736_v44  ;;  %v3738_v54 = vadd.f32 %v902_v51, %v4819_v39  ;;  %v904_v55 = vpop.f32.mrb[3].mxu1  ;;  %v947_v58 = vpop.f32.mrb[11].mxu0  ;;  %v3754_v8 = vadd.f32 %v945_v52, %v4829_v47 }
 0x218   :  { %v966_v61 = vmul.f32 0.5, %v3737_v50  ;;  %v3739_v1 = vadd.f32 %v904_v55, %v4824_v41  ;;  %v3755_v12 = vadd.f32 %v947_v58, %v4838_v7  ;;  %v976_v43 = vmul.f32 0.5, %v3753_v9 }
 0x219   :  { %4090 = vtanh.f32 %v958_v53  ;;  %v959_v3 = vmul.f32 0.5, %v3738_v54 }
 0x21a   :  { %4092 = vtanh.f32 %v966_v61  ;;  %v967_v4 = vmul.f32 0.5, %v3739_v1  ;;  %v977_v48 = vmul.f32 0.5, %v3755_v12 }
 0x21b   :  { %4094 = vtanh.f32 %v959_v3 }
 0x21c   :  { %4096 = vtanh.f32 %v3752_v2 }
 0x21d   :  { %4098 = vtanh.f32 %v967_v4 }
 0x21e   :  { %4100 = vtanh.f32 %v3754_v8 }
 0x21f   :  { %4102 = vtanh.f32 %v976_v43 }
 0x220   :  { %4104 = vtanh.f32 %v977_v48 }
 0x223   :  { %v4091_v15 = vpop.eup %4090 }
 0x224   :  { %v4093_v34 = vpop.eup %4092  ;;  %v962_v42 = vmul.f32 0.5, %v4091_v15 }
 0x225   :  { %v970_v44 = vmul.f32 0.5, %v4093_v34  ;;  %v4095_v50 = vpop.eup %4094 }
 0x226   :  { %v964_v51 = vadd.f32 0.5, %v962_v42  ;;  %v4097_v37 = vpop.eup %4096  ;;  %v963_v54 = vmul.f32 0.5, %v4095_v50 }
 0x227   :  { %v972_v53 = vadd.f32 0.5, %v970_v44  ;;  %v4099_v55 = vpop.eup %4098 }
 0x228   :  { %v986_v52 = vmul.f32 %v4097_v37, %v964_v51  ;;  %v965_v1 = vadd.f32 0.5, %v963_v54  ;;  %v971_v49 = vmul.f32 0.5, %v4099_v55  ;;  %v4101_v2 = vpop.eup %4100 }
 0x229   :  { %v984_v61 = vmul.f32 0.0, %v972_v53  ;;  %v4103_v12 = vpop.eup %4102 }
 0x22a   :  { %v973_v3 = vadd.f32 0.5, %v971_v49  ;;  %v987_v4 = vmul.f32 %v4101_v2, %v965_v1  ;;  %v4105_v15 = vpop.eup %4104  ;;  %v980_v34 = vmul.f32 0.5, %v4103_v12 }
 0x22b   :  { %v4843_v58 = vadd.f32 %v986_v52, %v984_v61  ;;  %v981_v42 = vmul.f32 0.5, %v4105_v15 }
 0x22c   :  { %v985_v8 = vmul.f32 0.0, %v973_v3  ;;  %v982_v44 = vadd.f32 0.5, %v980_v34 }
 0x22d   :  { %4106 = vtanh.f32 %v4843_v58  ;;  %v983_v50 = vadd.f32 0.5, %v981_v42 }
 0x22e   :  { %v4846_v9 = vadd.f32 %v987_v4, %v985_v8 }
 0x230   :  { %4108 = vtanh.f32 %v4846_v9 }
 0x237   :  { %v4107_v43 = vpop.eup %4106 }
 0x238   :  { %v4849_v51 = vmul.f32 %v4107_v43, %v982_v44 }
 0x23a   :  { %v4109_v48 = vpop.eup %4108  ;;  %vm996_vm12 = vcmp.gt.f32.partialorder %v4849_v51, 1.0 }
 0x23b   :  { %v4851_v37 = vmul.f32 %v4109_v48, %v983_v50 }
 0x23d   :  { %v1012_v53 = vpack.c.bf16 %v4851_v37, %v4849_v51  ;;  %vm997_vm13 = vcmp.gt.f32.partialorder %v4851_v37, 1.0 }
 0x23f   :  { %1238 = vmatmul.mubr.bf16.vlgmr.msra.gmra.mrb[4].mxu1 %v1012_v53  ;;  %1281 = vmatmul.mubr.bf16.vlgmr.msra.gmra.mrb[12].mxu0 %v1012_v53 }
 0x240   :  { %1547 = vmatpush1.bf16.msra.mxu1 %v4554_v56  ;;  %1590 = vmatpush1.bf16.msra.mxu0 %v4559_v57 }
 0x241   :  { %1548 = vmatprep.subr.bf16.mxu1 %v4568_v59  ;;  %1591 = vmatprep.subr.bf16.mxu0 %v4573_v60 }
 0x242   :  { %1578 = vmatprep.mubr.bf16.mxu1 %v4304_v46  ;;  %1621 = vmatprep.mubr.bf16.mxu0 %v4304_v46 }
 0x244   :  { %1549 = vmatpush1.bf16.msra.mxu1 %v4582_v63  ;;  %1592 = vmatpush1.bf16.msra.mxu0 %v4587_v0 }
 0x245   :  { %1550 = vmatprep.subr.bf16.mxu1 %v4594_v5  ;;  %1593 = vmatprep.subr.bf16.mxu0 %v4599_v6 }
 0x248   :  { %1551 = vmatpush1.bf16.msra.mxu1 %v4608_v10  ;;  %1594 = vmatpush1.bf16.msra.mxu0 %v4613_v11 }
 0x249   :  { %1552 = vmatprep.subr.bf16.mxu1 %v4624_v13  ;;  %1595 = vmatprep.subr.bf16.mxu0 %v4629_v14 }
 0x24c   :  { %1553 = vmatpush1.bf16.msra.mxu1 %v4646_v16  ;;  %1596 = vmatpush1.bf16.msra.mxu0 %v4651_v17 }
 0x24d   :  { %1554 = vmatprep.subr.bf16.mxu1 %v4658_v18  ;;  %1597 = vmatprep.subr.bf16.mxu0 %v4663_v19 }
 0x250   :  { %1555 = vmatpush1.bf16.msra.mxu1 %v4672_v20  ;;  %1598 = vmatpush1.bf16.msra.mxu0 %v4677_v21 }
 0x251   :  { %1556 = vmatprep.subr.bf16.mxu1 %v4684_v22  ;;  %1599 = vmatprep.subr.bf16.mxu0 %v4689_v23 }
 0x254   :  { %1557 = vmatpush1.bf16.msra.mxu1 %v4702_v24  ;;  %1600 = vmatpush1.bf16.msra.mxu0 %v4707_v25 }
 0x255   :  { %1558 = vmatprep.subr.bf16.mxu1 %v4714_v26  ;;  %1601 = vmatprep.subr.bf16.mxu0 %v4719_v27 }
 0x258   :  { %1559 = vmatpush1.bf16.msra.mxu1 %v4728_v28  ;;  %1602 = vmatpush1.bf16.msra.mxu0 %v4733_v29 }
 0x259   :  { %1560 = vmatprep.subr.bf16.mxu1 %v4740_v30  ;;  %1603 = vmatprep.subr.bf16.mxu0 %v4745_v31 }
 0x25c   :  { %1561 = vmatpush1.bf16.msra.mxu1 %v4758_v32  ;;  %1604 = vmatpush1.bf16.msra.mxu0 %v4763_v33 }
 0x25d   :  { %1930 = vmatprep.subr.bf16.mxu0 %v4542_v45 }
 0x312   :  { %v1239_v56 = vpop.f32.mrb[4].mxu1  ;;  %v1282_v59 = vpop.f32.mrb[12].mxu0 }
 0x313   :  { %v3740_v63 = vadd.f32 %v1239_v56, %v4819_v39  ;;  %v1241_v54 = vpop.f32.mrb[5].mxu1  ;;  %v1284_v55 = vpop.f32.mrb[13].mxu0  ;;  %v3756_v45 = vadd.f32 %v1282_v59, %v4829_v47 }
 0x314   :  { %v3741_v52 = vadd.f32 %v1241_v54, %v4824_v41  ;;  %v1243_v61 = vpop.f32.mrb[6].mxu1  ;;  %v1286_v1 = vpop.f32.mrb[14].mxu0  ;;  %v3757_v43 = vadd.f32 %v1284_v55, %v4838_v7 }
 0x315   :  { %v1299_v49 = vmul.f32 0.5, %v3740_v63  ;;  %v3742_v2 = vadd.f32 %v1243_v61, %v4819_v39  ;;  %v1245_v3 = vpop.f32.mrb[7].mxu1  ;;  %v1288_v4 = vpop.f32.mrb[15].mxu0  ;;  %v3758_v42 = vadd.f32 %v1286_v1, %v4829_v47 }
 0x316   :  { %v1307_v8 = vmul.f32 0.5, %v3741_v52  ;;  %v3743_v12 = vadd.f32 %v1245_v3, %v4824_v41  ;;  %v3759_v44 = vadd.f32 %v1288_v4, %v4838_v7  ;;  %v1317_v48 = vmul.f32 0.5, %v3757_v43 }
 0x317   :  { %4110 = vtanh.f32 %v1299_v49  ;;  %v1300_v15 = vmul.f32 0.5, %v3742_v2 }
 0x318   :  { %4112 = vtanh.f32 %v1307_v8  ;;  %v1308_v34 = vmul.f32 0.5, %v3743_v12  ;;  %v1318_v54 = vmul.f32 0.5, %v3759_v44 }
 0x319   :  { %4114 = vtanh.f32 %v1300_v15 }
 0x31a   :  { %4116 = vtanh.f32 %v3756_v45 }
 0x31b   :  { %4118 = vtanh.f32 %v1308_v34 }
 0x31c   :  { %4120 = vtanh.f32 %v3758_v42 }
 0x31d   :  { %4122 = vtanh.f32 %v1317_v48 }
 0x31e   :  { %4124 = vtanh.f32 %v1318_v54 }
 0x321   :  { %v4111_v50 = vpop.eup %4110 }
 0x322   :  { %v4113_v53 = vpop.eup %4112  ;;  %v1303_v56 = vmul.f32 0.5, %v4111_v50 }
 0x323   :  { %v1311_v63 = vmul.f32 0.5, %v4113_v53  ;;  %v4115_v59 = vpop.eup %4114 }
 0x324   :  { %v1305_v52 = vadd.f32 0.5, %v1303_v56  ;;  %v4117_v61 = vpop.eup %4116  ;;  %v1304_v2 = vmul.f32 0.5, %v4115_v59 }
 0x325   :  { %v1313_v49 = vadd.f32 0.5, %v1311_v63  ;;  %v4119_v1 = vpop.eup %4118 }
 0x326   :  { %v1327_v3 = vmul.f32 %v4117_v61, %v1305_v52  ;;  %v1306_v55 = vadd.f32 0.5, %v1304_v2  ;;  %v1312_v12 = vmul.f32 0.5, %v4119_v1  ;;  %v4121_v4 = vpop.eup %4120  ;;  %v4306_v61 = vmov 0.0  }
 0x327   :  { %v1325_v8 = vmul.f32 %v1313_v49, %v4843_v58  ;;  %v4123_v44 = vpop.eup %4122  ;;  %v4910_v49 = vsel %vm997_vm13, 1.0, %v4306_v61 }
 0x328   :  { %v1314_v15 = vadd.f32 0.5, %v1312_v12  ;;  %v1328_v34 = vmul.f32 %v4121_v4, %v1306_v55  ;;  %v4125_v50 = vpop.eup %4124  ;;  %v1321_v48 = vmul.f32 0.5, %v4123_v44 }
 0x329   :  { %v4897_v45 = vadd.f32 %v1327_v3, %v1325_v8  ;;  %v1322_v58 = vmul.f32 0.5, %v4125_v50 }
 0x32a   :  { %v1326_v42 = vmul.f32 %v1314_v15, %v4846_v9  ;;  %v1323_v56 = vadd.f32 0.5, %v1321_v48  ;;  %v4907_v9 = vsel %vm996_vm12, 1.0, %v4306_v61 }
 0x32b   :  { %4126 = vtanh.f32 %v4897_v45  ;;  %v1324_v54 = vadd.f32 0.5, %v1322_v58 }
 0x32c   :  { %v4901_v43 = vadd.f32 %v1328_v34, %v1326_v42 }
 0x32e   :  { %4128 = vtanh.f32 %v4901_v43 }
 0x335   :  { %v4127_v53 = vpop.eup %4126 }
 0x336   :  { %v1333_v63 = vmul.f32 %v4127_v53, %v1323_v56 }
 0x338   :  { %v4129_v59 = vpop.eup %4128  ;;  %v4913_v2 = vsub.f32 %v1333_v63, %v4907_v9 }
 0x339   :  { %v1334_v52 = vmul.f32 %v4129_v59, %v1324_v54 }
 0x33a   :  { %vm1337_vm14 = vcmp.gt.f32.partialorder %v4913_v2, 1.0 }
 0x33b   :  { %v4916_v1 = vsub.f32 %v1334_v52, %v4910_v49 }
 0x33d   :  { %v1353_v51 = vpack.c.bf16 %v4916_v1, %v4913_v2  ;;  %vm1338_vm15 = vcmp.gt.f32.partialorder %v4916_v1, 1.0 }
 0x33f   :  { %1579 = vmatmul.mubr.bf16.vlgmr.msra.gmra.mrb[8].mxu1 %v1353_v51  ;;  %1622 = vmatmul.mubr.bf16.vlgmr.msra.gmra.mrb[16].mxu0 %v1353_v51 }
 0x340   :  { %1931 = vmatpush1.bf16.msra.mxu0 %v4559_v57  ;;  %1919 = vmatprep.mubr.bf16.mxu1 %v4304_v46  ;;  %v3982_v57 = vld [vmem:[%s5406_s4 + $0x4] ss:$16 sps:$4 sm:$0xff]  }
 0x341   :  { %1932 = vmatprep.subr.bf16.mxu0 %v4573_v60  ;;  %1962 = vmatprep.mubr.bf16.mxu0 %v4304_v46  ;;  %v3980_v60 = vld [vmem:[%s5406_s4] ss:$16 sps:$4 sm:$0xff]  }
 0x342   :  { %1887 = vmatprep.subr.bf16.mxu1 %v3982_v57 }
 0x343   :  { %1888 = vmatpush1.bf16.msra.mxu1 %v3980_v60  ;;  %v4979_v60 = vsel %vm1337_vm14, 1.0, %v4306_v61 }
 0x344   :  { %1933 = vmatpush1.bf16.msra.mxu0 %v4587_v0  ;;  %v3985_v0 = vld [vmem:[%s5406_s4 + $0x24] ss:$16 sps:$4 sm:$0xff]  }
 0x345   :  { %1934 = vmatprep.subr.bf16.mxu0 %v4599_v6  ;;  %v3983_v6 = vld [vmem:[%s5406_s4 + $0x20] ss:$16 sps:$4 sm:$0xff]   ;;  %1889 = vmatprep.subr.bf16.mxu1 %v3985_v0  ;;  %v2035_v0 = vadd.f32 %v4910_v49, %v4907_v9 }
 0x347   :  { %1890 = vmatpush1.bf16.msra.mxu1 %v3983_v6 }
 0x348   :  { %1935 = vmatpush1.bf16.msra.mxu0 %v4613_v11  ;;  %1891 = vmatprep.subr.bf16.mxu1 %v4594_v5 }
 0x349   :  { %1936 = vmatprep.subr.bf16.mxu0 %v4629_v14 }
 0x34b   :  { %1892 = vmatpush1.bf16.msra.mxu1 %v4608_v10 }
 0x34c   :  { %1937 = vmatpush1.bf16.msra.mxu0 %v4651_v17  ;;  %1893 = vmatprep.subr.bf16.mxu1 %v4624_v13 }
 0x34d   :  { %1938 = vmatprep.subr.bf16.mxu0 %v4663_v19 }
 0x34f   :  { %1894 = vmatpush1.bf16.msra.mxu1 %v4646_v16 }
 0x350   :  { %1939 = vmatpush1.bf16.msra.mxu0 %v4677_v21  ;;  %1895 = vmatprep.subr.bf16.mxu1 %v4658_v18 }
 0x351   :  { %1940 = vmatprep.subr.bf16.mxu0 %v4689_v23 }
 0x353   :  { %1896 = vmatpush1.bf16.msra.mxu1 %v4672_v20 }
 0x354   :  { %1941 = vmatpush1.bf16.msra.mxu0 %v4707_v25  ;;  %1897 = vmatprep.subr.bf16.mxu1 %v4684_v22 }
 0x355   :  { %1942 = vmatprep.subr.bf16.mxu0 %v4719_v27 }
 0x357   :  { %1898 = vmatpush1.bf16.msra.mxu1 %v4702_v24 }
 0x358   :  { %1943 = vmatpush1.bf16.msra.mxu0 %v4733_v29  ;;  %1899 = vmatprep.subr.bf16.mxu1 %v4714_v26 }
 0x359   :  { %1944 = vmatprep.subr.bf16.mxu0 %v4745_v31 }
 0x35b   :  { %1900 = vmatpush1.bf16.msra.mxu1 %v4728_v28 }
 0x35c   :  { %1945 = vmatpush1.bf16.msra.mxu0 %v4763_v33  ;;  %1901 = vmatprep.subr.bf16.mxu1 %v4740_v30 }
 0x35f   :  { %1902 = vmatpush1.bf16.msra.mxu1 %v4758_v32 }
 0x412   :  { %v1580_v5 = vpop.f32.mrb[8].mxu1  ;;  %v1623_v10 = vpop.f32.mrb[16].mxu0 }
 0x413   :  { %v3744_v11 = vadd.f32 %v1580_v5, %v4819_v39  ;;  %v1582_v13 = vpop.f32.mrb[9].mxu1  ;;  %v1625_v14 = vpop.f32.mrb[17].mxu0  ;;  %v3760_v25 = vadd.f32 %v1623_v10, %v4829_v47 }
 0x414   :  { %v3745_v16 = vadd.f32 %v1582_v13, %v4824_v41  ;;  %v1584_v17 = vpop.f32.mrb[10].mxu1  ;;  %v1627_v18 = vpop.f32.mrb[18].mxu0  ;;  %v3761_v29 = vadd.f32 %v1625_v14, %v4838_v7  ;;  %v4986_v13 = vsel %vm1338_vm15, 1.0, %v4306_v61 }
 0x415   :  { %v1640_v19 = vmul.f32 0.5, %v3744_v11  ;;  %v3746_v20 = vadd.f32 %v1584_v17, %v4819_v39  ;;  %v1586_v21 = vpop.f32.mrb[11].mxu1  ;;  %v1629_v22 = vpop.f32.mrb[19].mxu0  ;;  %v3762_v28 = vadd.f32 %v1627_v18, %v4829_v47  ;;  %v2036_v11 = vadd.f32 %v4979_v60, %v2035_v0  ;;  %v4031_v0 = vld [vmem:[#allocation4 + $0xe8] ss:$16 sps:$4 sm:$0xff]  }
 0x416   :  { %v1648_v23 = vmul.f32 0.5, %v3745_v16  ;;  %v3747_v24 = vadd.f32 %v1586_v21, %v4824_v41  ;;  %v1658_v30 = vmul.f32 0.5, %v3761_v29  ;;  %v3763_v31 = vadd.f32 %v1629_v22, %v4838_v7  ;;  %v3997_v29 = vld [vmem:[#allocation4 + $0x2c] ss:$16 sps:$4 sm:$0xff]  }
 0x417   :  { %4130 = vtanh.f32 %v1640_v19  ;;  %v1641_v26 = vmul.f32 0.5, %v3746_v20  ;;  %v2037_v18 = vadd.f32 %v4986_v13, %v2036_v11 }
 0x418   :  { %4132 = vtanh.f32 %v1648_v23  ;;  %v1649_v27 = vmul.f32 0.5, %v3747_v24  ;;  %v1659_v8 = vmul.f32 0.5, %v3763_v31  ;;  %v3988_v24 = vld [vmem:[#allocation4 + $0x4] ss:$16 sps:$4 sm:$0xff]   ;;  %v3995_v31 = vld [vmem:[#allocation4 + $0x28] ss:$16 sps:$4 sm:$0xff]  }
 0x419   :  { %4134 = vtanh.f32 %v1641_v26  ;;  %v3986_v26 = vld [vmem:[#allocation4] ss:$16 sps:$4 sm:$0xff]   ;;  %2304 = vmatprep.subr.bf16.mxu1 %v3988_v24 }
 0x41a   :  { %4136 = vtanh.f32 %v3760_v25  ;;  %v3991_v25 = vld [vmem:[#allocation4 + $0xc] ss:$16 sps:$4 sm:$0xff]  }
 0x41b   :  { %4138 = vtanh.f32 %v1649_v27  ;;  %v3989_v27 = vld [vmem:[#allocation4 + $0x8] ss:$16 sps:$4 sm:$0xff]   ;;  %2377 = vmatprep.subr.bf16.mxu0 %v3991_v25 }
 0x41c   :  { %4140 = vtanh.f32 %v3762_v28  ;;  %v3994_v28 = vld [vmem:[#allocation4 + $0x24] ss:$16 sps:$4 sm:$0xff]  }
 0x41d   :  { %4142 = vtanh.f32 %v1658_v30  ;;  %v3992_v30 = vld [vmem:[#allocation4 + $0x20] ss:$16 sps:$4 sm:$0xff]  }
 0x41e   :  { %4144 = vtanh.f32 %v1659_v8  ;;  %v4006_v8 = vld [vmem:[#allocation4 + $0x64] ss:$16 sps:$4 sm:$0xff]  }
 0x421   :  { %v4131_v32 = vpop.eup %4130 }
 0x422   :  { %v4133_v33 = vpop.eup %4132  ;;  %v1644_v37 = vmul.f32 0.5, %v4131_v32  ;;  %v4000_v32 = vld [vmem:[#allocation4 + $0x44] ss:$16 sps:$4 sm:$0xff]  }
 0x423   :  { %v1652_v3 = vmul.f32 0.5, %v4133_v33  ;;  %v4135_v55 = vpop.eup %4134  ;;  %v4003_v33 = vld [vmem:[#allocation4 + $0x4c] ss:$16 sps:$4 sm:$0xff]  }
 0x424   :  { %v1646_v12 = vadd.f32 0.5, %v1644_v37  ;;  %v4137_v4 = vpop.eup %4136  ;;  %v1645_v34 = vmul.f32 0.5, %v4135_v55  ;;  %v3998_v37 = vld [vmem:[#allocation4 + $0x40] ss:$16 sps:$4 sm:$0xff]   ;;  %v4009_v55 = vld [vmem:[#allocation4 + $0x6c] ss:$16 sps:$4 sm:$0xff]  }
 0x425   :  { %v1654_v15 = vadd.f32 0.5, %v1652_v3  ;;  %v4139_v42 = vpop.eup %4138  ;;  %v4001_v3 = vld [vmem:[#allocation4 + $0x48] ss:$16 sps:$4 sm:$0xff]  }
 0x426   :  { %v1668_v44 = vmul.f32 %v4137_v4, %v1646_v12  ;;  %v1647_v48 = vadd.f32 0.5, %v1645_v34  ;;  %v1653_v58 = vmul.f32 0.5, %v4139_v42  ;;  %v4141_v53 = vpop.eup %4140  ;;  %v4004_v12 = vld [vmem:[#allocation4 + $0x60] ss:$16 sps:$4 sm:$0xff]   ;;  %v4007_v4 = vld [vmem:[#allocation4 + $0x68] ss:$16 sps:$4 sm:$0xff]  }
 0x427   :  { %v1666_v50 = vmul.f32 %v1654_v15, %v4897_v45  ;;  %v4143_v52 = vpop.eup %4142  ;;  %v4012_v15 = vld [vmem:[#allocation4 + $0x84] ss:$16 sps:$4 sm:$0xff]   ;;  %v4015_v34 = vld [vmem:[#allocation4 + $0x8c] ss:$16 sps:$4 sm:$0xff]   ;;  %v4010_v42 = vld [vmem:[#allocation4 + $0x80] ss:$16 sps:$4 sm:$0xff]  }
 0x428   :  { %v1655_v63 = vadd.f32 0.5, %v1653_v58  ;;  %v1669_v54 = vmul.f32 %v4141_v53, %v1647_v48  ;;  %v1662_v45 = vmul.f32 0.5, %v4143_v52  ;;  %v4145_v57 = vpop.eup %4144  ;;  %v4021_v48 = vld [vmem:[#allocation4 + $0xac] ss:$16 sps:$4 sm:$0xff]   ;;  %v4016_v58 = vld [vmem:[#allocation4 + $0xa0] ss:$16 sps:$4 sm:$0xff]  }
 0x429   :  { %v4970_v56 = vadd.f32 %v1668_v44, %v1666_v50  ;;  %v1663_v5 = vmul.f32 0.5, %v4145_v57  ;;  %v4013_v44 = vld [vmem:[#allocation4 + $0x88] ss:$16 sps:$4 sm:$0xff]   ;;  %v4018_v50 = vld [vmem:[#allocation4 + $0xa4] ss:$16 sps:$4 sm:$0xff]  }
 0x42a   :  { %v1667_v59 = vmul.f32 %v1655_v63, %v4901_v43  ;;  %v1664_v6 = vadd.f32 0.5, %v1662_v45  ;;  %v4019_v53 = vld [vmem:[#allocation4 + $0xa8] ss:$16 sps:$4 sm:$0xff]   ;;  %v4024_v63 = vld [vmem:[#allocation4 + $0xc4] ss:$16 sps:$4 sm:$0xff]  }
 0x42b   :  { %4146 = vtanh.f32 %v4970_v56  ;;  %v1665_v14 = vadd.f32 0.5, %v1663_v5  ;;  %v4025_v52 = vld [vmem:[#allocation4 + $0xc8] ss:$16 sps:$4 sm:$0xff]   ;;  %v4030_v45 = vld [vmem:[#allocation4 + $0xe4] ss:$16 sps:$4 sm:$0xff]  }
 0x42c   :  { %v4974_v51 = vadd.f32 %v1669_v54, %v1667_v59  ;;  %v4027_v54 = vld [vmem:[#allocation4 + $0xcc] ss:$16 sps:$4 sm:$0xff]   ;;  %v4022_v59 = vld [vmem:[#allocation4 + $0xc0] ss:$16 sps:$4 sm:$0xff]   ;;  %v5003_v5 = vld [vmem:[#allocation6 + $0x4] ss:$16 sps:$4 sm:$0xff]  }
 0x42d   :  { %v4028_v57 = vld [vmem:[#allocation4 + $0xe0] ss:$16 sps:$4 sm:$0xff]  }
 0x42e   :  { %4148 = vtanh.f32 %v4974_v51 }
 0x435   :  { %v4147_v43 = vpop.eup %4146 }
 0x436   :  { %v1674_v10 = vmul.f32 %v4147_v43, %v1664_v6  ;;  %v4033_v6 = vld [vmem:[#allocation4 + $0xec] ss:$16 sps:$4 sm:$0xff]  }
 0x437   :  { %v5006_v43 = vld [vmem:[#allocation6 + $0xc] ss:$16 sps:$4 sm:$0xff]  }
 0x438   :  { %v1676_v2 = vsub.f32 %v1674_v10, %v4979_v60  ;;  %v4149_v16 = vpop.eup %4148 }
 0x439   :  { %v1675_v17 = vmul.f32 %v4149_v16, %v1665_v14 }
 0x43a   :  { %vm1678_vm0 = vcmp.gt.f32.partialorder %v1676_v2, 1.0 }
 0x43b   :  { %v4991_v19 = vsel %vm1678_vm0, 1.0, %v4306_v61  ;;  %v1677_v1 = vsub.f32 %v1675_v17, %v4986_v13 }
 0x43c   :  { %v2038_v20 = vadd.f32 %v4991_v19, %v2037_v18 }
 0x43d   :  { %vm1679_vm1 = vcmp.gt.f32.partialorder %v1677_v1, 1.0  ;;  %v1694_v21 = vpack.c.bf16 %v1677_v1, %v1676_v2 }
 0x43e   :  { %v4996_v22 = vsel %vm1679_vm1, 1.0, %v4306_v61 }
 0x43f   :  { %1920 = vmatmul.mubr.bf16.vlgmr.msra.gmra.mrb[12].mxu1 %v1694_v21  ;;  %1963 = vmatmul.mubr.bf16.vlgmr.msra.gmra.mrb[20].mxu0 %v1694_v21  ;;  %v4999_v23 = vadd.f32 %v4996_v22, %v2038_v20 }
 0x440   :  { %2336 = vmatprep.mubr.bf16.mxu1 %v4304_v46  ;;  %2409 = vmatprep.mubr.bf16.mxu0 %v4304_v46 }
 0x441   :  { %2305 = vmatpush1.bf16.msra.mxu1 %v3986_v26  ;;  %2378 = vmatpush1.bf16.msra.mxu0 %v3989_v27 }
 0x442   :  { %2306 = vmatprep.subr.bf16.mxu1 %v3994_v28  ;;  %2379 = vmatprep.subr.bf16.mxu0 %v3997_v29 }
 0x445   :  { %2307 = vmatpush1.bf16.msra.mxu1 %v3992_v30  ;;  %2380 = vmatpush1.bf16.msra.mxu0 %v3995_v31 }
 0x446   :  { %2308 = vmatprep.subr.bf16.mxu1 %v4000_v32  ;;  %2381 = vmatprep.subr.bf16.mxu0 %v4003_v33 }
 0x449   :  { %2309 = vmatpush1.bf16.msra.mxu1 %v3998_v37  ;;  %2382 = vmatpush1.bf16.msra.mxu0 %v4001_v3 }
 0x44a   :  { %2310 = vmatprep.subr.bf16.mxu1 %v4006_v8  ;;  %2383 = vmatprep.subr.bf16.mxu0 %v4009_v55 }
 0x44d   :  { %2311 = vmatpush1.bf16.msra.mxu1 %v4004_v12  ;;  %2384 = vmatpush1.bf16.msra.mxu0 %v4007_v4 }
 0x44e   :  { %2312 = vmatprep.subr.bf16.mxu1 %v4012_v15  ;;  %2385 = vmatprep.subr.bf16.mxu0 %v4015_v34 }
 0x451   :  { %2313 = vmatpush1.bf16.msra.mxu1 %v4010_v42  ;;  %2386 = vmatpush1.bf16.msra.mxu0 %v4013_v44 }
 0x452   :  { %2314 = vmatprep.subr.bf16.mxu1 %v4018_v50  ;;  %2387 = vmatprep.subr.bf16.mxu0 %v4021_v48 }
 0x455   :  { %2315 = vmatpush1.bf16.msra.mxu1 %v4016_v58  ;;  %2388 = vmatpush1.bf16.msra.mxu0 %v4019_v53 }
 0x456   :  { %2316 = vmatprep.subr.bf16.mxu1 %v4024_v63  ;;  %2389 = vmatprep.subr.bf16.mxu0 %v4027_v54 }
 0x459   :  { %2317 = vmatpush1.bf16.msra.mxu1 %v4022_v59  ;;  %2390 = vmatpush1.bf16.msra.mxu0 %v4025_v52 }
 0x45a   :  { %2318 = vmatprep.subr.bf16.mxu1 %v4030_v45  ;;  %2391 = vmatprep.subr.bf16.mxu0 %v4033_v6 }
 0x45d   :  { %2319 = vmatpush1.bf16.msra.mxu1 %v4028_v57  ;;  %2392 = vmatpush1.bf16.msra.mxu0 %v4031_v0 }
 0x45e   :  { %2682 = vmatprep.subr.bf16.mxu1 %v5003_v5  ;;  %2725 = vmatprep.subr.bf16.mxu0 %v5006_v43 }
 0x512   :  { %v1921_v10 = vpop.f32.mrb[12].mxu1  ;;  %v1964_v11 = vpop.f32.mrb[20].mxu0 }
 0x513   :  { %v3748_v2 = vadd.f32 %v1921_v10, %v4819_v39  ;;  %v1923_v14 = vpop.f32.mrb[13].mxu1  ;;  %v1966_v16 = vpop.f32.mrb[21].mxu0  ;;  %v3764_v28 = vadd.f32 %v1964_v11, %v4829_v47 }
 0x514   :  { %v3749_v17 = vadd.f32 %v1923_v14, %v4824_v41  ;;  %v1925_v18 = vpop.f32.mrb[14].mxu1  ;;  %v1968_v1 = vpop.f32.mrb[22].mxu0  ;;  %v3765_v32 = vadd.f32 %v1966_v16, %v4838_v7 }
 0x515   :  { %v1981_v20 = vmul.f32 0.5, %v3748_v2  ;;  %v3750_v21 = vadd.f32 %v1925_v18, %v4819_v39  ;;  %v1927_v24 = vpop.f32.mrb[15].mxu1  ;;  %v1970_v25 = vpop.f32.mrb[23].mxu0  ;;  %v3766_v31 = vadd.f32 %v1968_v1, %v4829_v47 }
 0x516   :  { %v1989_v26 = vmul.f32 0.5, %v3749_v17  ;;  %v3751_v27 = vadd.f32 %v1927_v24, %v4824_v41  ;;  %v1999_v39 = vmul.f32 0.5, %v3765_v32  ;;  %v3767_v33 = vadd.f32 %v1970_v25, %v4838_v7 }
 0x517   :  { %4150 = vtanh.f32 %v1981_v20  ;;  %v1982_v29 = vmul.f32 0.5, %v3750_v21 }
 0x518   :  { %4152 = vtanh.f32 %v1989_v26  ;;  %v1990_v30 = vmul.f32 0.5, %v3751_v27  ;;  %v2000_v55 = vmul.f32 0.5, %v3767_v33  ;;  %v2053_v33 = vld [vmem:[%s5411_s9] sm:$0x1] }
 0x519   :  { %4154 = vtanh.f32 %v1982_v29 }
 0x51a   :  { %4156 = vtanh.f32 %v3764_v28 }
 0x51b   :  { %4158 = vtanh.f32 %v1990_v30 }
 0x51c   :  { %4160 = vtanh.f32 %v3766_v31 }
 0x51d   :  { %4162 = vtanh.f32 %v1999_v39 }
 0x51e   :  { %4164 = vtanh.f32 %v2000_v55 }
 0x521   :  { %v4151_v37 = vpop.eup %4150 }
 0x522   :  { %v4153_v3 = vpop.eup %4152  ;;  %v1985_v41 = vmul.f32 0.5, %v4151_v37 }
 0x523   :  { %v1993_v8 = vmul.f32 0.5, %v4153_v3  ;;  %v4155_v12 = vpop.eup %4154  ;;  %v2055_v3 = vld [vmem:[%s5412_s10] sm:$0x1] }
 0x524   :  { %v1987_v4 = vadd.f32 0.5, %v1985_v41  ;;  %v4157_v15 = vpop.eup %4156  ;;  %v1986_v42 = vmul.f32 0.5, %v4155_v12 }
 0x525   :  { %v1995_v34 = vadd.f32 0.5, %v1993_v8  ;;  %v4159_v47 = vpop.eup %4158 }
 0x526   :  { %v2009_v44 = vmul.f32 %v4157_v15, %v1987_v4  ;;  %v1988_v48 = vadd.f32 0.5, %v1986_v42  ;;  %v1994_v58 = vmul.f32 0.5, %v4159_v47  ;;  %v4161_v53 = vpop.eup %4160 }
 0x527   :  { %v2007_v50 = vmul.f32 %v1995_v34, %v4970_v56  ;;  %v4163_v52 = vpop.eup %4162 }
 0x528   :  { %v1996_v63 = vadd.f32 0.5, %v1994_v58  ;;  %v2010_v54 = vmul.f32 %v4161_v53, %v1988_v48  ;;  %v2003_v57 = vmul.f32 0.5, %v4163_v52  ;;  %v4165_v0 = vpop.eup %4164  ;;  %v5036_v58 = vld [vmem:[#allocation6] ss:$16 sps:$4 sm:$0xff]   ;;  %v5038_v53 = vld [vmem:[#allocation6 + $0x8] ss:$16 sps:$4 sm:$0xff]  }
 0x529   :  { %v2011_v7 = vadd.f32 %v2009_v44, %v2007_v50  ;;  %v2004_v10 = vmul.f32 0.5, %v4165_v0  ;;  %v5042_v52 = vld [vmem:[#allocation6 + $0x2c] ss:$16 sps:$4 sm:$0xff]   ;;  %v5050_v0 = vld [vmem:[#allocation6 + $0x20] ss:$16 sps:$4 sm:$0xff]  }
 0x52a   :  { %v2008_v59 = vmul.f32 %v1996_v63, %v4974_v51  ;;  %v2005_v6 = vadd.f32 0.5, %v2003_v57 }
 0x52b   :  { %4166 = vtanh.f32 %v2011_v7  ;;  %v2006_v14 = vadd.f32 0.5, %v2004_v10  ;;  %v5056_v10 = vld [vmem:[#allocation6 + $0x44] ss:$16 sps:$4 sm:$0xff]  }
 0x52c   :  { %v2012_v45 = vadd.f32 %v2010_v54, %v2008_v59 }
 0x52e   :  { %4168 = vtanh.f32 %v2012_v45 }
 0x535   :  { %v4167_v11 = vpop.eup %4166 }
 0x536   :  { %v2015_v2 = vmul.f32 %v4167_v11, %v2005_v6  ;;  %v5052_v6 = vld [vmem:[#allocation6 + $0x28] ss:$16 sps:$4 sm:$0xff]  }
 0x538   :  { %v2017_v56 = vsub.f32 %v2015_v2, %v4991_v19  ;;  %v4169_v16 = vpop.eup %4168 }
 0x539   :  { %v2016_v17 = vmul.f32 %v4169_v16, %v2006_v14  ;;  %v5070_v16 = vld [vmem:[#allocation6 + $0x64] ss:$16 sps:$4 sm:$0xff]  }
 0x53a   :  { %vm2019_vm2 = vcmp.gt.f32.partialorder %v2017_v56, 1.0  ;;  %v5058_v56 = vld [vmem:[#allocation6 + $0x4c] ss:$16 sps:$4 sm:$0xff]  }
 0x53b   :  { %v3590_v18 = vsel %vm2019_vm2, 1.0, %v4306_v61  ;;  %v2018_v1 = vsub.f32 %v2016_v17, %v4996_v22  ;;  %v5072_v17 = vld [vmem:[#allocation6 + $0x6c] ss:$16 sps:$4 sm:$0xff]  }
 0x53c   :  { %v2040_v51 = vadd.f32 %v3590_v18, %v4999_v23 }
 0x53d   :  { %vm2020_vm3 = vcmp.gt.f32.partialorder %v2018_v1, 1.0  ;;  %v5078_v1 = vld [vmem:[#allocation6 + $0x68] ss:$16 sps:$4 sm:$0xff]  }
 0x53e   :  { %v3591_v20 = vsel %vm2020_vm3, 1.0, %v4306_v61 }
 0x53f   :  { %v2041_v21 = vadd.f32 %v3591_v20, %v2040_v51  ;;  %v5082_v51 = vld [vmem:[#allocation6 + $0x84] ss:$16 sps:$4 sm:$0xff]  }
 0x541   :  { %v2042_v24 = vrot.slane %v2041_v21, 4 }
 0x543   :  { %v2043_v25 = vadd.f32 %v2042_v24, %v2041_v21  ;;  %v5090_v21 = vld [vmem:[#allocation6 + $0x80] ss:$16 sps:$4 sm:$0xff]   ;;  %v5092_v24 = vld [vmem:[#allocation6 + $0x88] ss:$16 sps:$4 sm:$0xff]  }
 0x545   :  { %v2044_v26 = vrot.slane %v2043_v25, 2 }
 0x547   :  { %v2045_v27 = vadd.f32 %v2044_v26, %v2043_v25  ;;  %v5096_v25 = vld [vmem:[#allocation6 + $0xa4] ss:$16 sps:$4 sm:$0xff]   ;;  %v5098_v26 = vld [vmem:[#allocation6 + $0xac] ss:$16 sps:$4 sm:$0xff]  }
 0x549   :  { %v2046_v28 = vrot.slane %v2045_v27, 1 }
 0x54b   :  { %v2047_v29 = vadd.f32 %v2046_v28, %v2045_v27  ;;  %v5102_v27 = vld [vmem:[#allocation6 + $0xa0] ss:$16 sps:$4 sm:$0xff]   ;;  %v5104_v28 = vld [vmem:[#allocation6 + $0xa8] ss:$16 sps:$4 sm:$0xff]  }
 0x54d   :  { %v2048_v30 = vmul.f32 0.015625, %v2047_v29  ;;  %v5108_v29 = vld [vmem:[#allocation6 + $0xc4] ss:$16 sps:$4 sm:$0xff]  }
 0x54f   :  { %v2049_v31 = vmul.f32 %v2048_v30, %v2048_v30 }
 0x551   :  { %v2050_v32 = vsub.f32 %v2048_v30, %v2049_v31  ;;  %v5116_v31 = vld [vmem:[#allocation6 + $0xc0] ss:$16 sps:$4 sm:$0xff]  }
 0x553   :  { %v2051_v39 = vadd.f32 1e-05, %v2050_v32  ;;  %v5118_v32 = vld [vmem:[#allocation6 + $0xc8] ss:$16 sps:$4 sm:$0xff]  }
 0x555   :  { %4170 = vrsqrt.f32 %v2051_v39  ;;  %v5122_v39 = vld [vmem:[#allocation6 + $0xe4] ss:$16 sps:$4 sm:$0xff]  }
 0x55f   :  { %v4171_v23 = vpop.eup %4170 }
 0x560   :  { %v2054_v37 = vmul.f32 %v4171_v23, %v2053_v33  ;;  %v5124_v33 = vld [vmem:[#allocation6 + $0xec] ss:$16 sps:$4 sm:$0xff]   ;;  %v5130_v23 = vld [vmem:[#allocation6 + $0xe0] ss:$16 sps:$4 sm:$0xff]  }
 0x562   :  { %v2056_v41 = vmul.f32 %v2054_v37, %v2048_v30  ;;  %v2062_v8 = vrot.slane %v2054_v37, %v4812_v36  ;;  %v5110_v30 = vld [vmem:[#allocation6 + $0xcc] ss:$16 sps:$4 sm:$0xff]   ;;  %v5132_v37 = vld [vmem:[#allocation6 + $0xe8] ss:$16 sps:$4 sm:$0xff]  }
 0x564   :  { %v2057_v55 = vsub.f32 %v2055_v3, %v2056_v41  ;;  %v2068_v12 = vmul.f32 %v4991_v19, %v2062_v8  ;;  %v2069_v4 = vmul.f32 %v4996_v22, %v2062_v8  ;;  %v2070_v15 = vmul.f32 %v3590_v18, %v2062_v8  ;;  %v5040_v22 = vld [vmem:[#allocation6 + $0x24] ss:$16 sps:$4 sm:$0xff]   ;;  %v5076_v18 = vld [vmem:[#allocation6 + $0x60] ss:$16 sps:$4 sm:$0xff]  }
 0x565   :  { %v2064_v42 = vmul.f32 %v4907_v9, %v2062_v8  ;;  %v2065_v47 = vmul.f32 %v4910_v49, %v2062_v8  ;;  %v2071_v44 = vmul.f32 %v3591_v20, %v2062_v8  ;;  %v2066_v49 = vmul.f32 %v4979_v60, %v2062_v8  ;;  %v5064_v60 = vld [vmem:[#allocation6 + $0x40] ss:$16 sps:$4 sm:$0xff]   ;;  %v5084_v20 = vld [vmem:[#allocation6 + $0x8c] ss:$16 sps:$4 sm:$0xff]  }
 0x566   :  { %v2076_v34 = vrot.slane %v2057_v55, %v4812_v36  ;;  %v2067_v57 = vmul.f32 %v4986_v13, %v2062_v8  ;;  %v5066_v13 = vld [vmem:[#allocation6 + $0x48] ss:$16 sps:$4 sm:$0xff]   ;;  %v2122_v3 = vld [vmem:[%s5410_s8] sm:$0xf] }
 0x567   :  { %v5182_v41 = vrot.slane %v2122_v3, %v4812_v36  ;;  %v5186_v8 = vrot.slane %v2122_v3, %v309_v38 }
 0x568   :  { %v2078_v50 = vadd.f32 %v2076_v34, %v2064_v42  ;;  %v2079_v48 = vadd.f32 %v2076_v34, %v2065_v47  ;;  %v2082_v7 = vadd.f32 %v2076_v34, %v2068_v12  ;;  %v2083_v63 = vadd.f32 %v2076_v34, %v2069_v4 }
 0x569   :  { %v2084_v54 = vadd.f32 %v2076_v34, %v2070_v15  ;;  %v2085_v19 = vadd.f32 %v2076_v34, %v2071_v44  ;;  %v2080_v11 = vadd.f32 %v2076_v34, %v2066_v49  ;;  %v2081_v2 = vadd.f32 %v2076_v34, %v2067_v57 }
 0x56a   :  { %v2086_v59 = vpack.c.bf16 %v2079_v48, %v2078_v50  ;;  %v2088_v45 = vpack.c.bf16 %v2083_v63, %v2082_v7  ;;  %v5191_v15 = vrot.slane %v2122_v3, %v313_v40 }
 0x56b   :  { %v5044_v9 = vpack.c.bf16 %v2085_v19, %v2084_v54  ;;  %v2087_v14 = vpack.c.bf16 %v2081_v2, %v2080_v11 }
 0x56c   :  { %2337 = vmatmul.mubr.bf16.vlgmr.msra.gmra.mrb[16].mxu1 %v2086_v59  ;;  %2410 = vmatmul.mubr.bf16.vlgmr.msra.gmra.mrb[24].mxu0 %v2086_v59 }
 0x56d   :  { %2683 = vmatpush1.bf16.msra.mxu1 %v5036_v58  ;;  %2726 = vmatpush1.bf16.msra.mxu0 %v5038_v53 }
 0x56e   :  { %2684 = vmatprep.subr.bf16.mxu1 %v5040_v22  ;;  %2727 = vmatprep.subr.bf16.mxu0 %v5042_v52 }
 0x56f   :  { %2346 = vmatprep.mubr.bf16.mxu1 %v4304_v46  ;;  %2419 = vmatprep.mubr.bf16.mxu0 %v4304_v46 }
 0x571   :  { %2685 = vmatpush1.bf16.msra.mxu1 %v5050_v0  ;;  %2728 = vmatpush1.bf16.msra.mxu0 %v5052_v6 }
 0x572   :  { %2686 = vmatprep.subr.bf16.mxu1 %v5056_v10  ;;  %2729 = vmatprep.subr.bf16.mxu0 %v5058_v56 }
 0x574   :  { %2347 = vmatmul.mubr.bf16.gmra.mrb[20].mxu1 %v2087_v14  ;;  %2420 = vmatmul.mubr.bf16.gmra.mrb[28].mxu0 %v2087_v14 }
 0x575   :  { %2687 = vmatpush1.bf16.msra.mxu1 %v5064_v60  ;;  %2730 = vmatpush1.bf16.msra.mxu0 %v5066_v13 }
 0x576   :  { %2688 = vmatprep.subr.bf16.mxu1 %v5070_v16  ;;  %2731 = vmatprep.subr.bf16.mxu0 %v5072_v17 }
 0x577   :  { %2356 = vmatprep.mubr.bf16.mxu1 %v4304_v46  ;;  %2429 = vmatprep.mubr.bf16.mxu0 %v4304_v46 }
 0x579   :  { %2689 = vmatpush1.bf16.msra.mxu1 %v5076_v18  ;;  %2732 = vmatpush1.bf16.msra.mxu0 %v5078_v1 }
 0x57a   :  { %2690 = vmatprep.subr.bf16.mxu1 %v5082_v51  ;;  %2733 = vmatprep.subr.bf16.mxu0 %v5084_v20 }
 0x57c   :  { %2357 = vmatmul.mubr.bf16.gmra.mrb[24].mxu1 %v2088_v45  ;;  %2430 = vmatmul.mubr.bf16.gmra.mrb[32].mxu0 %v2088_v45  ;;  %v5199_v45 = vrot.slane %v2122_v3, %v317_v62 }
 0x57d   :  { %2691 = vmatpush1.bf16.msra.mxu1 %v5090_v21  ;;  %2734 = vmatpush1.bf16.msra.mxu0 %v5092_v24 }
 0x57e   :  { %2692 = vmatprep.subr.bf16.mxu1 %v5096_v25  ;;  %2735 = vmatprep.subr.bf16.mxu0 %v5098_v26 }
 0x57f   :  { %2366 = vmatprep.mubr.bf16.mxu1 %v4304_v46  ;;  %2439 = vmatprep.mubr.bf16.mxu0 %v4304_v46 }
 0x581   :  { %2693 = vmatpush1.bf16.msra.mxu1 %v5102_v27  ;;  %2736 = vmatpush1.bf16.msra.mxu0 %v5104_v28 }
 0x582   :  { %2694 = vmatprep.subr.bf16.mxu1 %v5108_v29  ;;  %2737 = vmatprep.subr.bf16.mxu0 %v5110_v30 }
 0x584   :  { %2367 = vmatmul.mubr.bf16.gmra.mrb[28].mxu1 %v5044_v9  ;;  %2440 = vmatmul.mubr.bf16.gmra.mrb[36].mxu0 %v5044_v9 }
 0x585   :  { %2695 = vmatpush1.bf16.msra.mxu1 %v5116_v31  ;;  %2738 = vmatpush1.bf16.msra.mxu0 %v5118_v32 }
 0x586   :  { %2696 = vmatprep.subr.bf16.mxu1 %v5122_v39  ;;  %2739 = vmatprep.subr.bf16.mxu0 %v5124_v33 }
 0x587   :  { %2714 = vmatprep.mubr.bf16.mxu1 %v4304_v46  ;;  %2757 = vmatprep.mubr.bf16.mxu0 %v4304_v46 }
 0x589   :  { %2697 = vmatpush1.bf16.msra.mxu1 %v5130_v23  ;;  %2740 = vmatpush1.bf16.msra.mxu0 %v5132_v37 }
 0x58a   :  { %2831 = vmatprep.subr.bf16.mxu1 %v5003_v5  ;;  %2874 = vmatprep.subr.bf16.mxu0 %v5006_v43 }
 0x58c   :  { %2715 = vmatmul.mubr.bf16.vlgmr.msra.gmra.mrb[16].mxu1 %v4304_v46  ;;  %2758 = vmatmul.mubr.bf16.vlgmr.msra.gmra.mrb[24].mxu0 %v4304_v46 }
 0x58d   :  { %2832 = vmatpush1.bf16.msra.mxu1 %v5036_v58  ;;  %2875 = vmatpush1.bf16.msra.mxu0 %v5038_v53 }
 0x58e   :  { %2833 = vmatprep.subr.bf16.mxu1 %v5040_v22  ;;  %2876 = vmatprep.subr.bf16.mxu0 %v5042_v52 }
 0x58f   :  { %2863 = vmatprep.mubr.bf16.mxu1 %v4304_v46  ;;  %2906 = vmatprep.mubr.bf16.mxu0 %v4304_v46 }
 0x591   :  { %2834 = vmatpush1.bf16.msra.mxu1 %v5050_v0  ;;  %2877 = vmatpush1.bf16.msra.mxu0 %v5052_v6 }
 0x592   :  { %2835 = vmatprep.subr.bf16.mxu1 %v5056_v10  ;;  %2878 = vmatprep.subr.bf16.mxu0 %v5058_v56 }
 0x595   :  { %2836 = vmatpush1.bf16.msra.mxu1 %v5064_v60  ;;  %2879 = vmatpush1.bf16.msra.mxu0 %v5066_v13 }
 0x596   :  { %2837 = vmatprep.subr.bf16.mxu1 %v5070_v16  ;;  %2880 = vmatprep.subr.bf16.mxu0 %v5072_v17 }
 0x599   :  { %2838 = vmatpush1.bf16.msra.mxu1 %v5076_v18  ;;  %2881 = vmatpush1.bf16.msra.mxu0 %v5078_v1 }
 0x59a   :  { %2839 = vmatprep.subr.bf16.mxu1 %v5082_v51  ;;  %2882 = vmatprep.subr.bf16.mxu0 %v5084_v20 }
 0x59d   :  { %2840 = vmatpush1.bf16.msra.mxu1 %v5090_v21  ;;  %2883 = vmatpush1.bf16.msra.mxu0 %v5092_v24 }
 0x59e   :  { %2841 = vmatprep.subr.bf16.mxu1 %v5096_v25  ;;  %2884 = vmatprep.subr.bf16.mxu0 %v5098_v26 }
 0x5a1   :  { %2842 = vmatpush1.bf16.msra.mxu1 %v5102_v27  ;;  %2885 = vmatpush1.bf16.msra.mxu0 %v5104_v28 }
 0x5a2   :  { %2843 = vmatprep.subr.bf16.mxu1 %v5108_v29  ;;  %2886 = vmatprep.subr.bf16.mxu0 %v5110_v30 }
 0x5a5   :  { %2844 = vmatpush1.bf16.msra.mxu1 %v5116_v31  ;;  %2887 = vmatpush1.bf16.msra.mxu0 %v5118_v32 }
 0x5a6   :  { %2845 = vmatprep.subr.bf16.mxu1 %v5122_v39  ;;  %2888 = vmatprep.subr.bf16.mxu0 %v5124_v33 }
 0x5a9   :  { %2846 = vmatpush1.bf16.msra.mxu1 %v5130_v23  ;;  %2889 = vmatpush1.bf16.msra.mxu0 %v5132_v37 }
 0x5aa   :  { %2980 = vmatprep.subr.bf16.mxu1 %v5003_v5  ;;  %3023 = vmatprep.subr.bf16.mxu0 %v5006_v43 }
 0x65f   :  { %v2716_v55 = vpop.f32.mrb[16].mxu1  ;;  %v2759_v12 = vpop.f32.mrb[24].mxu0 }
 0x660   :  { %v3768_v4 = vadd.f32 %v2716_v55, %v5182_v41  ;;  %v2718_v34 = vpop.f32.mrb[17].mxu1  ;;  %v2761_v42 = vpop.f32.mrb[25].mxu0  ;;  %v3784_v19 = vadd.f32 %v2759_v12, %v5191_v15 }
 0x661   :  { %v3769_v47 = vadd.f32 %v2718_v34, %v5186_v8  ;;  %v2720_v44 = vpop.f32.mrb[18].mxu1  ;;  %v2763_v50 = vpop.f32.mrb[26].mxu0  ;;  %v3785_v49 = vadd.f32 %v2761_v42, %v5199_v45 }
 0x662   :  { %v2776_v36 = vmul.f32 0.5, %v3768_v4  ;;  %v3770_v48 = vadd.f32 %v2720_v44, %v5182_v41  ;;  %v2722_v7 = vpop.f32.mrb[19].mxu1  ;;  %v2765_v38 = vpop.f32.mrb[27].mxu0  ;;  %v3786_v9 = vadd.f32 %v2763_v50, %v5191_v15 }
 0x663   :  { %v2784_v63 = vmul.f32 0.5, %v3769_v47  ;;  %v3771_v54 = vadd.f32 %v2722_v7, %v5186_v8  ;;  %v3787_v57 = vadd.f32 %v2765_v38, %v5199_v45  ;;  %v2794_v55 = vmul.f32 0.5, %v3785_v49 }
 0x664   :  { %4172 = vtanh.f32 %v2776_v36  ;;  %v2777_v59 = vmul.f32 0.5, %v3770_v48 }
 0x665   :  { %4174 = vtanh.f32 %v2784_v63  ;;  %v2785_v40 = vmul.f32 0.5, %v3771_v54  ;;  %v2795_v4 = vmul.f32 0.5, %v3787_v57 }
 0x666   :  { %4176 = vtanh.f32 %v2777_v59 }
 0x667   :  { %4178 = vtanh.f32 %v3784_v19 }
 0x668   :  { %4180 = vtanh.f32 %v2785_v40 }
 0x669   :  { %4182 = vtanh.f32 %v3786_v9 }
 0x66a   :  { %4184 = vtanh.f32 %v2794_v55 }
 0x66b   :  { %4186 = vtanh.f32 %v2795_v4 }
 0x66e   :  { %v4173_v11 = vpop.eup %4172 }
 0x66f   :  { %v4175_v2 = vpop.eup %4174  ;;  %v2780_v14 = vmul.f32 0.5, %v4173_v11 }
 0x670   :  { %v2788_v12 = vmul.f32 0.5, %v4175_v2  ;;  %v4177_v34 = vpop.eup %4176 }
 0x671   :  { %v2782_v35 = vadd.f32 0.5, %v2780_v14  ;;  %v4179_v62 = vpop.eup %4178  ;;  %v2781_v47 = vmul.f32 0.5, %v4177_v34 }
 0x672   :  { %v2790_v3 = vadd.f32 0.5, %v2788_v12  ;;  %v4181_v44 = vpop.eup %4180 }
 0x673   :  { %v2804_v50 = vmul.f32 %v4179_v62, %v2782_v35  ;;  %v2783_v48 = vadd.f32 0.5, %v2781_v47  ;;  %v2789_v42 = vmul.f32 0.5, %v4181_v44  ;;  %v4183_v7 = vpop.eup %4182 }
 0x674   :  { %v2802_v36 = vmul.f32 0.0, %v2790_v3  ;;  %v4185_v40 = vpop.eup %4184 }
 0x675   :  { %v2791_v63 = vadd.f32 0.5, %v2789_v42  ;;  %v2805_v54 = vmul.f32 %v4183_v7, %v2783_v48  ;;  %v4187_v9 = vpop.eup %4186  ;;  %v2798_v49 = vmul.f32 0.5, %v4185_v40 }
 0x676   :  { %v5204_v38 = vadd.f32 %v2804_v50, %v2802_v36  ;;  %v2799_v57 = vmul.f32 0.5, %v4187_v9 }
 0x677   :  { %v2803_v19 = vmul.f32 0.0, %v2791_v63  ;;  %v2800_v2 = vadd.f32 0.5, %v2798_v49 }
 0x678   :  { %4188 = vtanh.f32 %v5204_v38  ;;  %v2801_v14 = vadd.f32 0.5, %v2799_v57 }
 0x679   :  { %v5207_v59 = vadd.f32 %v2805_v54, %v2803_v19 }
 0x67b   :  { %4190 = vtanh.f32 %v5207_v59 }
 0x682   :  { %v4189_v11 = vpop.eup %4188 }
 0x683   :  { %v5210_v12 = vmul.f32 %v4189_v11, %v2800_v2 }
 0x685   :  { %v4191_v55 = vpop.eup %4190  ;;  %vm2824_vm4 = vcmp.gt.f32.partialorder %v5210_v12, 1.0 }
 0x686   :  { %v5212_v4 = vmul.f32 %v4191_v55, %v2801_v14 }
 0x688   :  { %v2830_v34 = vpack.c.bf16 %v5212_v4, %v5210_v12  ;;  %vm2825_vm5 = vcmp.gt.f32.partialorder %v5212_v4, 1.0 }
 0x68a   :  { %2864 = vmatmul.mubr.bf16.vlgmr.msra.gmra.mrb[20].mxu1 %v2830_v34  ;;  %2907 = vmatmul.mubr.bf16.vlgmr.msra.gmra.mrb[28].mxu0 %v2830_v34 }
 0x68b   :  { %2981 = vmatpush1.bf16.msra.mxu1 %v5036_v58  ;;  %3024 = vmatpush1.bf16.msra.mxu0 %v5038_v53 }
 0x68c   :  { %2982 = vmatprep.subr.bf16.mxu1 %v5040_v22  ;;  %3025 = vmatprep.subr.bf16.mxu0 %v5042_v52 }
 0x68d   :  { %3012 = vmatprep.mubr.bf16.mxu1 %v4304_v46  ;;  %3055 = vmatprep.mubr.bf16.mxu0 %v4304_v46 }
 0x68f   :  { %2983 = vmatpush1.bf16.msra.mxu1 %v5050_v0  ;;  %3026 = vmatpush1.bf16.msra.mxu0 %v5052_v6 }
 0x690   :  { %2984 = vmatprep.subr.bf16.mxu1 %v5056_v10  ;;  %3027 = vmatprep.subr.bf16.mxu0 %v5058_v56 }
 0x693   :  { %2985 = vmatpush1.bf16.msra.mxu1 %v5064_v60  ;;  %3028 = vmatpush1.bf16.msra.mxu0 %v5066_v13 }
 0x694   :  { %2986 = vmatprep.subr.bf16.mxu1 %v5070_v16  ;;  %3029 = vmatprep.subr.bf16.mxu0 %v5072_v17 }
 0x697   :  { %2987 = vmatpush1.bf16.msra.mxu1 %v5076_v18  ;;  %3030 = vmatpush1.bf16.msra.mxu0 %v5078_v1 }
 0x698   :  { %2988 = vmatprep.subr.bf16.mxu1 %v5082_v51  ;;  %3031 = vmatprep.subr.bf16.mxu0 %v5084_v20 }
 0x69b   :  { %2989 = vmatpush1.bf16.msra.mxu1 %v5090_v21  ;;  %3032 = vmatpush1.bf16.msra.mxu0 %v5092_v24 }
 0x69c   :  { %2990 = vmatprep.subr.bf16.mxu1 %v5096_v25  ;;  %3033 = vmatprep.subr.bf16.mxu0 %v5098_v26 }
 0x69f   :  { %2991 = vmatpush1.bf16.msra.mxu1 %v5102_v27  ;;  %3034 = vmatpush1.bf16.msra.mxu0 %v5104_v28 }
 0x6a0   :  { %2992 = vmatprep.subr.bf16.mxu1 %v5108_v29  ;;  %3035 = vmatprep.subr.bf16.mxu0 %v5110_v30 }
 0x6a3   :  { %2993 = vmatpush1.bf16.msra.mxu1 %v5116_v31  ;;  %3036 = vmatpush1.bf16.msra.mxu0 %v5118_v32 }
 0x6a4   :  { %2994 = vmatprep.subr.bf16.mxu1 %v5122_v39  ;;  %3037 = vmatprep.subr.bf16.mxu0 %v5124_v33 }
 0x6a7   :  { %2995 = vmatpush1.bf16.msra.mxu1 %v5130_v23  ;;  %3038 = vmatpush1.bf16.msra.mxu0 %v5132_v37 }
 0x6a8   :  { %3129 = vmatprep.subr.bf16.mxu1 %v5003_v5  ;;  %3172 = vmatprep.subr.bf16.mxu0 %v5006_v43 }
 0x75d   :  { %v2865_v35 = vpop.f32.mrb[20].mxu1  ;;  %v2908_v62 = vpop.f32.mrb[28].mxu0 }
 0x75e   :  { %v3772_v3 = vadd.f32 %v2865_v35, %v5182_v41  ;;  %v2867_v47 = vpop.f32.mrb[21].mxu1  ;;  %v2910_v44 = vpop.f32.mrb[29].mxu0  ;;  %v3788_v43 = vadd.f32 %v2908_v62, %v5191_v15 }
 0x75f   :  { %v3773_v50 = vadd.f32 %v2867_v47, %v5186_v8  ;;  %v2869_v36 = vpop.f32.mrb[22].mxu1  ;;  %v2912_v48 = vpop.f32.mrb[30].mxu0  ;;  %v3789_v57 = vadd.f32 %v2910_v44, %v5199_v45 }
 0x760   :  { %v2925_v42 = vmul.f32 0.5, %v3772_v3  ;;  %v3774_v7 = vadd.f32 %v2869_v36, %v5182_v41  ;;  %v2871_v63 = vpop.f32.mrb[23].mxu1  ;;  %v2914_v54 = vpop.f32.mrb[31].mxu0  ;;  %v3790_v49 = vadd.f32 %v2912_v48, %v5191_v15 }
 0x761   :  { %v2933_v19 = vmul.f32 0.5, %v3773_v50  ;;  %v3775_v5 = vadd.f32 %v2871_v63, %v5186_v8  ;;  %v3791_v11 = vadd.f32 %v2914_v54, %v5199_v45  ;;  %v2943_v14 = vmul.f32 0.5, %v3789_v57 }
 0x762   :  { %4192 = vtanh.f32 %v2925_v42  ;;  %v2926_v40 = vmul.f32 0.5, %v3774_v7 }
 0x763   :  { %4194 = vtanh.f32 %v2933_v19  ;;  %v2934_v9 = vmul.f32 0.5, %v3775_v5  ;;  %v2944_v3 = vmul.f32 0.5, %v3791_v11 }
 0x764   :  { %4196 = vtanh.f32 %v2926_v40 }
 0x765   :  { %4198 = vtanh.f32 %v3788_v43 }
 0x766   :  { %4200 = vtanh.f32 %v2934_v9 }
 0x767   :  { %4202 = vtanh.f32 %v3790_v49 }
 0x768   :  { %4204 = vtanh.f32 %v2943_v14 }
 0x769   :  { %4206 = vtanh.f32 %v2944_v3 }
 0x76c   :  { %v4193_v2 = vpop.eup %4192 }
 0x76d   :  { %v4195_v55 = vpop.eup %4194  ;;  %v2929_v34 = vmul.f32 0.5, %v4193_v2 }
 0x76e   :  { %v2937_v35 = vmul.f32 0.5, %v4195_v55  ;;  %v4197_v62 = vpop.eup %4196 }
 0x76f   :  { %v2931_v47 = vadd.f32 0.5, %v2929_v34  ;;  %v4199_v50 = vpop.eup %4198  ;;  %v2930_v42 = vmul.f32 0.5, %v4197_v62 }
 0x770   :  { %v2939_v36 = vadd.f32 0.5, %v2937_v35  ;;  %v4201_v48 = vpop.eup %4200 }
 0x771   :  { %v2953_v7 = vmul.f32 %v4199_v50, %v2931_v47  ;;  %v2932_v44 = vadd.f32 0.5, %v2930_v42  ;;  %v2938_v19 = vmul.f32 0.5, %v4201_v48  ;;  %v4203_v54 = vpop.eup %4202  ;;  %v3657_v47 = vsel %vm2825_vm5, 1.0, %v4306_v61 }
 0x772   :  { %v2951_v63 = vmul.f32 %v2939_v36, %v5204_v38  ;;  %v4205_v57 = vpop.eup %4204 }
 0x773   :  { %v2940_v43 = vadd.f32 0.5, %v2938_v19  ;;  %v2954_v40 = vmul.f32 %v4203_v54, %v2932_v44  ;;  %v4207_v11 = vpop.eup %4206  ;;  %v2947_v2 = vmul.f32 0.5, %v4205_v57 }
 0x774   :  { %v5259_v5 = vadd.f32 %v2953_v7, %v2951_v63  ;;  %v2948_v38 = vmul.f32 0.5, %v4207_v11 }
 0x775   :  { %v2952_v9 = vmul.f32 %v2940_v43, %v5207_v59  ;;  %v2949_v55 = vadd.f32 0.5, %v2947_v2  ;;  %v3656_v59 = vsel %vm2824_vm4, 1.0, %v4306_v61 }
 0x776   :  { %4208 = vtanh.f32 %v5259_v5  ;;  %v2950_v35 = vadd.f32 0.5, %v2948_v38 }
 0x777   :  { %v5263_v49 = vadd.f32 %v2954_v40, %v2952_v9 }
 0x779   :  { %4210 = vtanh.f32 %v5263_v49 }
 0x780   :  { %v4209_v14 = vpop.eup %4208 }
 0x781   :  { %v2959_v34 = vmul.f32 %v4209_v14, %v2949_v55 }
 0x783   :  { %v4211_v3 = vpop.eup %4210  ;;  %v5270_v50 = vsub.f32 %v2959_v34, %v3656_v59 }
 0x784   :  { %v2960_v62 = vmul.f32 %v4211_v3, %v2950_v35 }
 0x785   :  { %vm2973_vm6 = vcmp.gt.f32.partialorder %v5270_v50, 1.0 }
 0x786   :  { %v5272_v36 = vsub.f32 %v2960_v62, %v3657_v47  ;;  %v3658_v3 = vsel %vm2973_vm6, 1.0, %v4306_v61  ;;  %v2963_v62 = vadd.f32 %v5270_v50, %v5210_v12 }
 0x788   :  { %v2979_v42 = vpack.c.bf16 %v5272_v36, %v5270_v50  ;;  %vm2974_vm7 = vcmp.gt.f32.partialorder %v5272_v36, 1.0 }
 0x78a   :  { %3013 = vmatmul.mubr.bf16.vlgmr.msra.gmra.mrb[24].mxu1 %v2979_v42  ;;  %3056 = vmatmul.mubr.bf16.vlgmr.msra.gmra.mrb[32].mxu0 %v2979_v42 }
 0x78b   :  { %3130 = vmatpush1.bf16.msra.mxu1 %v5036_v58  ;;  %3173 = vmatpush1.bf16.msra.mxu0 %v5038_v53 }
 0x78c   :  { %3131 = vmatprep.subr.bf16.mxu1 %v5040_v22  ;;  %3174 = vmatprep.subr.bf16.mxu0 %v5042_v52 }
 0x78d   :  { %3161 = vmatprep.mubr.bf16.mxu1 %v4304_v46  ;;  %3204 = vmatprep.mubr.bf16.mxu0 %v4304_v46 }
 0x78f   :  { %3132 = vmatpush1.bf16.msra.mxu1 %v5050_v0  ;;  %3175 = vmatpush1.bf16.msra.mxu0 %v5052_v6 }
 0x790   :  { %3133 = vmatprep.subr.bf16.mxu1 %v5056_v10  ;;  %3176 = vmatprep.subr.bf16.mxu0 %v5058_v56 }
 0x793   :  { %3134 = vmatpush1.bf16.msra.mxu1 %v5064_v60  ;;  %3177 = vmatpush1.bf16.msra.mxu0 %v5066_v13 }
 0x794   :  { %3135 = vmatprep.subr.bf16.mxu1 %v5070_v16  ;;  %3178 = vmatprep.subr.bf16.mxu0 %v5072_v17 }
 0x797   :  { %3136 = vmatpush1.bf16.msra.mxu1 %v5076_v18  ;;  %3179 = vmatpush1.bf16.msra.mxu0 %v5078_v1 }
 0x798   :  { %3137 = vmatprep.subr.bf16.mxu1 %v5082_v51  ;;  %3180 = vmatprep.subr.bf16.mxu0 %v5084_v20 }
 0x79b   :  { %3138 = vmatpush1.bf16.msra.mxu1 %v5090_v21  ;;  %3181 = vmatpush1.bf16.msra.mxu0 %v5092_v24 }
 0x79c   :  { %3139 = vmatprep.subr.bf16.mxu1 %v5096_v25  ;;  %3182 = vmatprep.subr.bf16.mxu0 %v5098_v26 }
 0x79f   :  { %3140 = vmatpush1.bf16.msra.mxu1 %v5102_v27  ;;  %3183 = vmatpush1.bf16.msra.mxu0 %v5104_v28 }
 0x7a0   :  { %3141 = vmatprep.subr.bf16.mxu1 %v5108_v29  ;;  %3184 = vmatprep.subr.bf16.mxu0 %v5110_v30 }
 0x7a3   :  { %3142 = vmatpush1.bf16.msra.mxu1 %v5116_v31  ;;  %3185 = vmatpush1.bf16.msra.mxu0 %v5118_v32 }
 0x7a4   :  { %3143 = vmatprep.subr.bf16.mxu1 %v5122_v39  ;;  %3186 = vmatprep.subr.bf16.mxu0 %v5124_v33 }
 0x7a7   :  { %3144 = vmatpush1.bf16.msra.mxu1 %v5130_v23  ;;  %3187 = vmatpush1.bf16.msra.mxu0 %v5132_v37 }
 0x7a8   :  { %3716 = vmatprep.subr.bf16.mxu1 %v4306_v61 }
 0x85d   :  { %v3014_v46 = vpop.f32.mrb[24].mxu1  ;;  %v3057_v58 = vpop.f32.mrb[32].mxu0 }
 0x85e   :  { %v3776_v53 = vadd.f32 %v3014_v46, %v5182_v41  ;;  %v3016_v22 = vpop.f32.mrb[25].mxu1  ;;  %v3059_v52 = vpop.f32.mrb[33].mxu0  ;;  %v3792_v1 = vadd.f32 %v3057_v58, %v5191_v15  ;;  %v3659_v58 = vsel %vm2974_vm7, 1.0, %v4306_v61 }
 0x85f   :  { %v3777_v0 = vadd.f32 %v3016_v22, %v5186_v8  ;;  %v3018_v6 = vpop.f32.mrb[26].mxu1  ;;  %v3061_v10 = vpop.f32.mrb[34].mxu0  ;;  %v3793_v24 = vadd.f32 %v3059_v52, %v5199_v45  ;;  %v4082_v52 = vld [vmem:[%s5413_s11] sm:$0xff]  }
 0x860   :  { %v3074_v56 = vmul.f32 0.5, %v3776_v53  ;;  %v3778_v60 = vadd.f32 %v3018_v6, %v5182_v41  ;;  %v3020_v13 = vpop.f32.mrb[27].mxu1  ;;  %v3063_v16 = vpop.f32.mrb[35].mxu0  ;;  %v3794_v21 = vadd.f32 %v3061_v10, %v5191_v15  ;;  %v2964_v53 = vadd.f32 %v5272_v36, %v5212_v4  ;;  %v4083_v4 = vld [vmem:[%s5413_s11 + $0x8] sm:$0xff]   ;;  %v4084_v36 = vld [vmem:[%s5413_s11 + $0x10] sm:$0xff]   ;;  %v4086_v6 = vld [vmem:[%s5413_s11 + $0x20] sm:$0xff]  }
 0x861   :  { %v3082_v17 = vmul.f32 0.5, %v3777_v0  ;;  %v3779_v18 = vadd.f32 %v3020_v13, %v5186_v8  ;;  %v3092_v25 = vmul.f32 0.5, %v3793_v24  ;;  %v3795_v26 = vadd.f32 %v3063_v16, %v5199_v45  ;;  %v4085_v0 = vld [vmem:[%s5413_s11 + $0x18] sm:$0xff]   ;;  %v4087_v10 = vld [vmem:[%s5413_s11 + $0x28] sm:$0xff]  }
 0x862   :  { %4212 = vtanh.f32 %v3074_v56  ;;  %v3075_v51 = vmul.f32 0.5, %v3778_v60  ;;  %v4088_v56 = vld [vmem:[%s5413_s11 + $0x30] sm:$0xff]   ;;  %v4089_v60 = vld [vmem:[%s5413_s11 + $0x38] sm:$0xff]  }
 0x863   :  { %4214 = vtanh.f32 %v3082_v17  ;;  %v3083_v20 = vmul.f32 0.5, %v3779_v18  ;;  %v3093_v31 = vmul.f32 0.5, %v3795_v26 }
 0x864   :  { %4216 = vtanh.f32 %v3075_v51 }
 0x865   :  { %4218 = vtanh.f32 %v3792_v1 }
 0x866   :  { %4220 = vtanh.f32 %v3083_v20 }
 0x867   :  { %4222 = vtanh.f32 %v3794_v21 }
 0x868   :  { %4224 = vtanh.f32 %v3092_v25 }
 0x869   :  { %4226 = vtanh.f32 %v3093_v31 }
 0x86c   :  { %v4213_v27 = vpop.eup %4212 }
 0x86d   :  { %v4215_v28 = vpop.eup %4214  ;;  %v3078_v29 = vmul.f32 0.5, %v4213_v27 }
 0x86e   :  { %v3086_v30 = vmul.f32 0.5, %v4215_v28  ;;  %v4217_v32 = vpop.eup %4216 }
 0x86f   :  { %v3080_v39 = vadd.f32 0.5, %v3078_v29  ;;  %v4219_v33 = vpop.eup %4218  ;;  %v3079_v37 = vmul.f32 0.5, %v4217_v32 }
 0x870   :  { %v3088_v23 = vadd.f32 0.5, %v3086_v30  ;;  %v4221_v48 = vpop.eup %4220 }
 0x871   :  { %v3102_v7 = vmul.f32 %v4219_v33, %v3080_v39  ;;  %v3081_v44 = vadd.f32 0.5, %v3079_v37  ;;  %v3087_v19 = vmul.f32 0.5, %v4221_v48  ;;  %v4223_v54 = vpop.eup %4222 }
 0x872   :  { %v3100_v63 = vmul.f32 %v3088_v23, %v5259_v5  ;;  %v4225_v11 = vpop.eup %4224 }
 0x873   :  { %v3089_v40 = vadd.f32 0.5, %v3087_v19  ;;  %v3103_v9 = vmul.f32 %v4223_v54, %v3081_v44  ;;  %v3096_v38 = vmul.f32 0.5, %v4225_v11  ;;  %v4227_v14 = vpop.eup %4226 }
 0x874   :  { %v5318_v43 = vadd.f32 %v3102_v7, %v3100_v63  ;;  %v3097_v55 = vmul.f32 0.5, %v4227_v14 }
 0x875   :  { %v3101_v57 = vmul.f32 %v3089_v40, %v5263_v49  ;;  %v3098_v5 = vadd.f32 0.5, %v3096_v38 }
 0x876   :  { %4228 = vtanh.f32 %v5318_v43  ;;  %v3099_v49 = vadd.f32 0.5, %v3097_v55 }
 0x877   :  { %v5322_v2 = vadd.f32 %v3103_v9, %v3101_v57 }
 0x879   :  { %4230 = vtanh.f32 %v5322_v2 }
 0x880   :  { %v4229_v34 = vpop.eup %4228 }
 0x881   :  { %v3108_v35 = vmul.f32 %v4229_v34, %v3098_v5 }
 0x883   :  { %v5329_v59 = vsub.f32 %v3108_v35, %v3658_v3  ;;  %v4231_v47 = vpop.eup %4230 }
 0x884   :  { %v3109_v42 = vmul.f32 %v4231_v47, %v3099_v49 }
 0x885   :  { %v5333_v46 = vadd.f32 %v5329_v59, %v2963_v62  ;;  %vm3122_vm9 = vcmp.gt.f32.partialorder %v5329_v59, 1.0 }
 0x886   :  { %v5338_v22 = vsub.f32 %v3109_v42, %v3659_v58 }
 0x888   :  { %v3128_v12 = vpack.c.bf16 %v5338_v22, %v5329_v59  ;;  %v5343_v50 = vadd.f32 %v5338_v22, %v2964_v53  ;;  %vm3123_vm10 = vcmp.gt.f32.partialorder %v5338_v22, 1.0 }
 0x88a   :  { %3162 = vmatmul.mubr.bf16.vlgmr.msra.gmra.mrb[28].mxu1 %v3128_v12  ;;  %3205 = vmatmul.mubr.bf16.vlgmr.msra.gmra.mrb[36].mxu0 %v3128_v12  ;;  %v3660_v12 = vsel %vm3122_vm9, 1.0, %v4306_v61 }
 0x88b   :  { %3717 = vmatpush3.bf16.msra.mxu1 %v4082_v52  ;;  %3732 = vmatprep.mubr.msk.bf16.mxu1 %vm4307_vm8, %v4306_v61 }
 0x88c   :  { %3718 = vmatprep.subr.bf16.mxu1 %v4306_v61 }
 0x88f   :  { %3719 = vmatpush3.bf16.msra.mxu1 %v4083_v4 }
 0x890   :  { %3720 = vmatprep.subr.bf16.mxu1 %v4306_v61 }
 0x893   :  { %3721 = vmatpush3.bf16.msra.mxu1 %v4084_v36 }
 0x894   :  { %3722 = vmatprep.subr.bf16.mxu1 %v4306_v61 }
 0x897   :  { %3723 = vmatpush3.bf16.msra.mxu1 %v4085_v0 }
 0x898   :  { %3724 = vmatprep.subr.bf16.mxu1 %v4306_v61 }
 0x89b   :  { %3725 = vmatpush3.bf16.msra.mxu1 %v4086_v6  ;;  %v3661_v6 = vsel %vm3123_vm10, 1.0, %v4306_v61 }
 0x89c   :  { %3726 = vmatprep.subr.bf16.mxu1 %v4306_v61 }
 0x89f   :  { %3727 = vmatpush3.bf16.msra.mxu1 %v4087_v10 }
 0x8a0   :  { %3728 = vmatprep.subr.bf16.mxu1 %v4306_v61 }
 0x8a3   :  { %3729 = vmatpush3.bf16.msra.mxu1 %v4088_v56 }
 0x8a4   :  { %3730 = vmatprep.subr.bf16.mxu1 %v4306_v61 }
 0x8a7   :  { %3731 = vmatpush3.bf16.msra.mxu1 %v4089_v60 }
 0x95d   :  { %v3163_v13 = vpop.f32.mrb[28].mxu1  ;;  %v3206_v16 = vpop.f32.mrb[36].mxu0 }
 0x95e   :  { %v3780_v17 = vadd.f32 %v3163_v13, %v5182_v41  ;;  %v3165_v18 = vpop.f32.mrb[29].mxu1  ;;  %v3208_v1 = vpop.f32.mrb[37].mxu0  ;;  %v3796_v30 = vadd.f32 %v3206_v16, %v5191_v15  ;;  %v3662_v16 = vld [vmem:[%s5414_s12] ss:$0 sm:$0xff] }
 0x95f   :  { %v3781_v51 = vadd.f32 %v3165_v18, %v5186_v8  ;;  %v3167_v20 = vpop.f32.mrb[30].mxu1  ;;  %v3210_v21 = vpop.f32.mrb[38].mxu0  ;;  %v3797_v33 = vadd.f32 %v3208_v1, %v5199_v45 }
 0x960   :  { %v3223_v24 = vmul.f32 0.5, %v3780_v17  ;;  %v3782_v25 = vadd.f32 %v3167_v20, %v5182_v41  ;;  %v3169_v26 = vpop.f32.mrb[31].mxu1  ;;  %v3212_v27 = vpop.f32.mrb[39].mxu0  ;;  %v3798_v39 = vadd.f32 %v3210_v21, %v5191_v15 }
 0x961   :  { %v3231_v28 = vmul.f32 0.5, %v3781_v51  ;;  %v3783_v29 = vadd.f32 %v3169_v26, %v5186_v8  ;;  %v3241_v41 = vmul.f32 0.5, %v3797_v33  ;;  %v3799_v23 = vadd.f32 %v3212_v27, %v5199_v45 }
 0x962   :  { %4232 = vtanh.f32 %v3223_v24  ;;  %v3224_v31 = vmul.f32 0.5, %v3782_v25 }
 0x963   :  { %4234 = vtanh.f32 %v3231_v28  ;;  %v3232_v32 = vmul.f32 0.5, %v3783_v29  ;;  %v3242_v63 = vmul.f32 0.5, %v3799_v23 }
 0x964   :  { %4236 = vtanh.f32 %v3224_v31 }
 0x965   :  { %4238 = vtanh.f32 %v3796_v30 }
 0x966   :  { %4240 = vtanh.f32 %v3232_v32 }
 0x967   :  { %4242 = vtanh.f32 %v3798_v39 }
 0x968   :  { %4244 = vtanh.f32 %v3241_v41 }
 0x969   :  { %4246 = vtanh.f32 %v3242_v63 }
 0x96c   :  { %v4233_v37 = vpop.eup %4232 }
 0x96d   :  { %v4235_v48 = vpop.eup %4234  ;;  %v3227_v8 = vmul.f32 0.5, %v4233_v37 }
 0x96e   :  { %v3235_v7 = vmul.f32 0.5, %v4235_v48  ;;  %v4237_v44 = vpop.eup %4236 }
 0x96f   :  { %v3229_v19 = vadd.f32 0.5, %v3227_v8  ;;  %v4239_v54 = vpop.eup %4238  ;;  %v3228_v9 = vmul.f32 0.5, %v4237_v44 }
 0x970   :  { %v3237_v40 = vadd.f32 0.5, %v3235_v7  ;;  %v4241_v15 = vpop.eup %4240 }
 0x971   :  { %v3251_v57 = vmul.f32 %v4239_v54, %v3229_v19  ;;  %v3230_v38 = vadd.f32 0.5, %v3228_v9  ;;  %v3236_v14 = vmul.f32 0.5, %v4241_v15  ;;  %v4243_v5 = vpop.eup %4242 }
 0x972   :  { %v3249_v11 = vmul.f32 %v3237_v40, %v5318_v43  ;;  %v4245_v3 = vpop.eup %4244 }
 0x973   :  { %v3238_v55 = vadd.f32 0.5, %v3236_v14  ;;  %v3252_v34 = vmul.f32 %v4243_v5, %v3230_v38  ;;  %v3245_v49 = vmul.f32 0.5, %v4245_v3  ;;  %v4247_v47 = vpop.eup %4246 }
 0x974   :  { %v3253_v45 = vadd.f32 %v3251_v57, %v3249_v11  ;;  %v3246_v58 = vmul.f32 0.5, %v4247_v47 }
 0x975   :  { %v3250_v35 = vmul.f32 %v3238_v55, %v5322_v2  ;;  %v3247_v42 = vadd.f32 0.5, %v3245_v49 }
 0x976   :  { %4248 = vtanh.f32 %v3253_v45  ;;  %v3248_v4 = vadd.f32 0.5, %v3246_v58 }
 0x977   :  { %v3254_v62 = vadd.f32 %v3252_v34, %v3250_v35 }
 0x979   :  { %4250 = vtanh.f32 %v3254_v62 }
 0x980   :  { %v4249_v43 = vpop.eup %4248 }
 0x981   :  { %v3257_v53 = vmul.f32 %v4249_v43, %v3247_v42 }
 0x983   :  { %v3259_v52 = vsub.f32 %v3257_v53, %v3660_v12  ;;  %v4251_v36 = vpop.eup %4250 }
 0x984   :  { %v3258_v0 = vmul.f32 %v4251_v36, %v3248_v4 }
 0x985   :  { %v3261_v2 = vadd.f32 %v3259_v52, %v5333_v46 }
 0x986   :  { %v3260_v10 = vsub.f32 %v3258_v0, %v3661_v6 }
 0x987   :  { %v3263_v59 = vmul.f32 0.25, %v3261_v2 }
 0x988   :  { %v3262_v56 = vadd.f32 %v3260_v10, %v5343_v50 }
 0x98a   :  { %v3264_v60 = vmul.f32 0.25, %v3262_v56 }
 0x98c   :  { %v3265_v13 = vpack.c.bf16 %v3264_v60, %v3263_v59 }
 0x98e   :  { %3733 = vmatmul.mubr.bf16.vlgmr.msra.gmra.mrb[32].mxu1 %v3265_v13 }
 0xa61   :  { %v3371_v17 = vpop.f32.mrb[32].mxu1 }
 0xa62   :  { %v3372_v22 = vadd.f32 %v3662_v16, %v3371_v17  ;;  %v3734_v18 = vpop.f32.mrb[33].mxu1 }
 0xa63   :  { %v3374_v1 = vpop.f32.mrb[34].mxu1 }
 0xa64   :  { %3379 = vst.msk [vmem:[%s5415_s13] sm:$0xff] %vm3378_vm11, %v3372_v22  ;;  %v3375_v61 = vadd.f32 %v3662_v16, %v3374_v1  ;;  %v3735_v46 = vpop.f32.mrb[35].mxu1 }
 0xa66   :  { %3380 = vst.msk [vmem:[%s5415_s13 + $0x8] sm:$0xff] %vm3378_vm11, %v3375_v61 }
 0xa67   :  { %3385 = vsyncpa [#allocation5], 1 }
 0xa68   :  { %3386 = vsyncpa [#allocation7], 1 }

</bundles_post_ra>
